<compile_context>
chip_gen: v6e
topology: v6e:2x2x1
jax: 0.10.0
libtpu: 0.0.40
codegen_flags: <defaults>
</compile_context>

<pallas_src>
import functools

import jax
import jax.numpy as jnp
from jax.experimental import pallas as pl
from jax.experimental.pallas import tpu as pltpu


MLP_HIDDEN = 64   # TODO(synk): MLP hidden width not given in the reference; 64 assumed.
_LANE = 128


def _round_up(n, m):
    return ((n + m - 1) // m) * m


def _row_tile(n, cap):
    """Largest multiple-of-8 divisor of n that is <= cap (or n itself if n <= cap)."""
    if n <= cap:
        return n
    for t in range(cap - cap % 8, 7, -8):
        if n % t == 0:
            return t
    return n


# --------------------------------------------------------------------------
# Kernel 1: fused PolylineSubGraph (all layers) + final max-pool
# --------------------------------------------------------------------------

def _subgraph_stack_kernel(x_ref, *refs):
    """x_ref: [tg, V, F] (tg = tile of (polyline, batch) groups).
    refs = (w1, b1, w2, b2, we1, we2, be) per layer  +  (out_ref,).
    out: [tg, F * 2**L]."""
    o_ref = refs[-1]
    w_refs = refs[:-1]
    num_layers = len(w_refs) // 7

    tg, V, F = x_ref.shape
    x = x_ref[...]                                       # [tg, V, d]
    d = F
    for li in range(num_layers):
        w1, b1, w2, b2, we1, we2, be = w_refs[7 * li:7 * li + 7]
        xr = x.reshape(tg * V, d)                        # batch all rows into the MXU M dim
        h = jnp.dot(xr, w1[...], preferred_element_type=jnp.float32) + b1[...]
        h = jnp.maximum(h, 0.0)
        enc = jnp.dot(h, w2[...], preferred_element_type=jnp.float32) + b2[...]   # [tg*V, d]
        agg = jnp.max(enc.reshape(tg, V, d), axis=1)                              # [tg, d]
        # edge_encoder(cat([enc, agg_broadcast], -1)) == enc@We1 + agg@We2 + be
        edge = jnp.dot(enc, we1[...], preferred_element_type=jnp.float32)         # [tg*V, 2d]
        edge = edge.reshape(tg, V, 2 * d)
        edge_agg = jnp.dot(agg, we2[...], preferred_element_type=jnp.float32)     # [tg, 2d]
        x = edge + edge_agg[:, None, :] + be[...]                                 # [tg, V, 2d]
        d = 2 * d
    o_ref[...] = jnp.max(x, axis=1)                      # final max-pool over vectors


def fused_subgraph(x, layer_params):
    G, V, F = x.shape
    E = F * (2 ** len(layer_params))
    tg = _row_tile(G, 128)
    grid = (G // tg,)

    weight_arrays, weight_specs = [], []
    for p in layer_params:
        for name in ("w1", "b1", "w2", "b2", "we1", "we2", "be"):
            a = p[name]
            weight_arrays.append(a)
            weight_specs.append(pl.BlockSpec(a.shape, lambda i: (0, 0)))

    return pl.pallas_call(
        _subgraph_stack_kernel,
        out_shape=jax.ShapeDtypeStruct((G, E), jnp.float32),
        grid=grid,
        in_specs=[pl.BlockSpec((tg, V, F), lambda i: (i, 0, 0))] + weight_specs,
        out_specs=pl.BlockSpec((tg, E), lambda i: (i, 0)),
        compiler_params=pltpu.CompilerParams(dimension_semantics=("parallel",)),
    )(x, *weight_arrays)


# --------------------------------------------------------------------------
# Kernel 2: fused GlobalGraphLayer (folded q/k/v matmul + MHA + out-proj)
# --------------------------------------------------------------------------

def _global_layer_kernel(x_ref, wqkv_ref, bqkv_ref, wout_ref, bout_ref, o_ref, *, P, B, H):
    E = x_ref.shape[-1]
    Dh = E // H
    scale = 1.0 / (Dh ** 0.5)

    # One batched matmul produces q, k, v for every (polyline, batch) row.
    qkv = (jnp.dot(x_ref[...], wqkv_ref[...], preferred_element_type=jnp.float32)
           + bqkv_ref[...])                              # [P*B, 3E]
    wout = wout_ref[...]                                 # [E, E]   (hoisted loads)
    bout = bout_ref[...]                                 # [1, E]

    # batch_first=False semantics: attention over the batch axis (length B),
    # independently for each polyline p and head h.  P, H are small & static.
    for p in range(P):
        blk = qkv[p * B:(p + 1) * B, :]                  # [B, 3E]
        acc = jnp.zeros((B, E), jnp.float32) + bout
        for h in range(H):
            q = blk[:, h * Dh:(h + 1) * Dh] * scale
            k = blk[:, E + h * Dh:E + (h + 1) * Dh]
            v = blk[:, 2 * E + h * Dh:2 * E + (h + 1) * Dh]
            s = jnp.einsum("qd,kd->qk", q, k, preferred_element_type=jnp.float32)  # [B, B]
            s = s - jnp.max(s, axis=-1, keepdims=True)
            e = jnp.exp(s)
            prob = e * pl.reciprocal(jnp.sum(e, axis=-1, keepdims=True), approx=True)
            ho = jnp.dot(prob, v, preferred_element_type=jnp.float32)              # [B, Dh]
            # concat(heads) @ Wout == sum_h head_h @ Wout[h*Dh:(h+1)*Dh]  (no concat needed)
            acc = acc + jnp.dot(ho, wout[h * Dh:(h + 1) * Dh, :],
                                preferred_element_type=jnp.float32)
        o_ref[p] = acc


def fused_global_layer(x_flat, p, *, P, B, H):
    R, E = x_flat.shape
    out = pl.pallas_call(
        functools.partial(_global_layer_kernel, P=P, B=B, H=H),
        out_shape=jax.ShapeDtypeStruct((P, B, E), jnp.float32),
        grid=(1,),
        in_specs=[
            pl.BlockSpec((R, E), lambda i: (0, 0)),
            pl.BlockSpec(p["wqkv"].shape, lambda i: (0, 0)),
            pl.BlockSpec(p["bqkv"].shape, lambda i: (0, 0)),
            pl.BlockSpec(p["out_w"].shape, lambda i: (0, 0)),
            pl.BlockSpec(p["out_b"].shape, lambda i: (0, 0)),
        ],
        out_specs=pl.BlockSpec((P, B, E), lambda i: (0, 0, 0)),
        compiler_params=pltpu.CompilerParams(dimension_semantics=("arbitrary",)),
    )(x_flat, p["wqkv"], p["bqkv"], p["out_w"], p["out_b"])
    return out.reshape(P * B, E)


# --------------------------------------------------------------------------
# Kernel 3: fused trajectory decoder (Linear -> ReLU -> Linear), lane-padded out
# --------------------------------------------------------------------------

def _decoder_kernel(x_ref, w1_ref, b1_ref, w2_ref, b2_ref, o_ref):
    h = jnp.dot(x_ref[...], w1_ref[...], preferred_element_type=jnp.float32) + b1_ref[...]
    h = jnp.maximum(h, 0.0)
    o_ref[...] = jnp.dot(h, w2_ref[...], preferred_element_type=jnp.float32) + b2_ref[...]


def fused_decoder(x, dec):
    M, E = x.shape
    Np = dec["w2p"].shape[1]
    tm = _row_tile(M, 512)
    return pl.pallas_call(
        _decoder_kernel,
        out_shape=jax.ShapeDtypeStruct((M, Np), jnp.float32),
        grid=(M // tm,),
        in_specs=[
            pl.BlockSpec((tm, E), lambda i: (i, 0)),
            pl.BlockSpec(dec["w1"].shape, lambda i: (0, 0)),
            pl.BlockSpec(dec["b1"].shape, lambda i: (0, 0)),
            pl.BlockSpec(dec["w2p"].shape, lambda i: (0, 0)),
            pl.BlockSpec(dec["b2p"].shape, lambda i: (0, 0)),
        ],
        out_specs=pl.BlockSpec((tm, Np), lambda i: (i, 0)),
        compiler_params=pltpu.CompilerParams(dimension_semantics=("parallel",)),
    )(x, dec["w1"], dec["b1"], dec["w2p"], dec["b2p"])


# --------------------------------------------------------------------------
# Parameter init (deterministic, PyTorch-Linear-like uniform) with weight folding
# --------------------------------------------------------------------------

def _init_linear(key, fan_in, fan_out):
    k1, k2 = jax.random.split(key)
    bound = 1.0 / (fan_in ** 0.5)
    w = jax.random.uniform(k1, (fan_in, fan_out), jnp.float32, -bound, bound)
    b = jax.random.uniform(k2, (fan_out,), jnp.float32, -bound, bound)
    return w, b


def init_params(key, cfg):
    F = cfg["num_features"]
    L = cfg["num_subgraph_layers"]
    E = F * (2 ** L)
    T, Fp = cfg["num_future_steps"], cfg["num_prediction_features"]

    keys = iter(jax.random.split(key, 128))
    params = {"subgraph": [], "global": [], "dec": {}}

    for i in range(L):
        d = F * (2 ** i)
        w1, b1 = _init_linear(next(keys), d, MLP_HIDDEN)
        w2, b2 = _init_linear(next(keys), MLP_HIDDEN, d)
        we, be = _init_linear(next(keys), 2 * d, 2 * d)
        params["subgraph"].append(dict(
            w1=w1, b1=b1.reshape(1, -1),
            w2=w2, b2=b2.reshape(1, -1),
            we1=we[:d], we2=we[d:], be=be.reshape(1, -1)))

    for _ in range(cfg["num_global_layers"]):
        folded_w, folded_b = [], []
        for _name in ("q", "k", "v"):
            w_pre, b_pre = _init_linear(next(keys), E, E)    # W_query / W_key / W_value
            w_in, b_in = _init_linear(next(keys), E, E)      # MHA in-projection
            folded_w.append(w_pre @ w_in)                    # fold two bias-only linears
            folded_b.append(b_pre @ w_in + b_in)
        out_w, out_b = _init_linear(next(keys), E, E)        # MHA out-projection
        params["global"].append(dict(
            wqkv=jnp.concatenate(folded_w, axis=1),          # [E, 3E]
            bqkv=jnp.concatenate(folded_b, axis=0).reshape(1, -1),
            out_w=out_w, out_b=out_b.reshape(1, -1)))

    n_out = T * Fp
    n_pad = _round_up(n_out, _LANE)                          # lane-dense decoder output
    w1, b1 = _init_linear(next(keys), E, MLP_HIDDEN)
    w2, b2 = _init_linear(next(keys), MLP_HIDDEN, n_out)
    params["dec"] = dict(
        w1=w1, b1=b1.reshape(1, -1),
        w2p=jnp.pad(w2, ((0, 0), (0, n_pad - n_out))),
        b2p=jnp.pad(b2, (0, n_pad - n_out)).reshape(1, -1))
    return params


# --------------------------------------------------------------------------
# Full forward: host glue + 3 fused Pallas kernels
# --------------------------------------------------------------------------

def vectornet_prediction_forward(params, polylines_list, target_index, cfg):
    B = target_index.shape[0]
    T, Fp = cfg["num_future_steps"], cfg["num_prediction_features"]
    H = cfg["num_global_heads"]
    P = len(polylines_list)

    poly = jnp.stack(polylines_list, axis=0)                  # [P, V, F]
    _, V, F = poly.shape

    # Reference: per polyline, x = poly.repeat(B,1,1); x = x - x[target_index]
    X = jnp.broadcast_to(poly[:, None], (P, B, V, F))
    Xc = X - X[:, target_index]                               # exact reference semantics
    Xg = Xc.reshape(P * B, V, F)                              # group g = p*B + b (p-major)

    feats = fused_subgraph(Xg, params["subgraph"])            # [P*B, E]
    E = feats.shape[-1]

    gx = feats
    for lp in params["global"]:
        gx = fused_global_layer(gx, lp, P=P, B=B, H=H)        # [P*B, E]

    gx_pbe = gx.reshape(P, B, E)
    # GlobalGraph: output_node = polyline_features[:, target_index, :]  ([B, B, E])
    out_node = jnp.transpose(gx_pbe[target_index], (1, 0, 2))
    flat = out_node.reshape(B * B, E)

    y = fused_decoder(flat, params["dec"])                    # [B*B, lane-padded]
    y = y[:, :T * Fp]
    return y.reshape(-1, T, Fp)                               # [B*B, T, Fp]


# --------------------------------------------------------------------------
# Demo
# --------------------------------------------------------------------------

if __name__ == "__main__":
    cfg = dict(
        num_vectors=8,            # num past steps
        num_features=4,           # vector feature dim
        num_subgraph_layers=2,    # -> emb_dim = 4 * 2^2 = 16
        num_global_layers=1,
        num_global_heads=2,       # head_dim = 8
        num_future_steps=6,
        num_prediction_features=2,
    )

    key = jax.random.PRNGKey(0)
    kparams, kdata = jax.random.split(key)
    params = init_params(kparams, cfg)

    num_polylines = 4
    poly_keys = jax.random.split(kdata, num_polylines)
    polylines_list = [
        jax.random.normal(k, (cfg["num_vectors"], cfg["num_features"]), jnp.float32)
        for k in poly_keys
    ]
    target_index = jnp.array([0, 1], dtype=jnp.int32)         # batch_size = 2

    fwd = jax.jit(functools.partial(vectornet_prediction_forward, cfg=cfg))
    out = fwd(params, polylines_list, target_index)
    out = jax.block_until_ready(out)

    B = target_index.shape[0]
    expected_shape = (B * B, cfg["num_future_steps"], cfg["num_prediction_features"])
    assert out.shape == expected_shape, out.shape
    assert bool(jnp.all(jnp.isfinite(out)))
    print("KERNEL_OK")
</pallas_src>

<mosaic_0001>
module attributes {stable_mosaic.version = 11 : i64} {
  func.func @_global_layer_kernel(%arg0: i32, %arg1: memref<8x16xf32, #tpu.memory_space<vmem>>, %arg2: memref<16x48xf32, #tpu.memory_space<vmem>>, %arg3: memref<1x48xf32, #tpu.memory_space<vmem>>, %arg4: memref<16x16xf32, #tpu.memory_space<vmem>>, %arg5: memref<1x16xf32, #tpu.memory_space<vmem>>, %arg6: memref<4x2x16xf32, #tpu.memory_space<vmem>>) attributes {dimension_semantics = [#tpu.dimension_semantics<arbitrary>], iteration_bounds = array<i64: 1>, scalar_prefetch = 0 : i64, scratch_operands = 0 : i64, tpu.core_type = #tpu.core_type<tc>, window_params = [{pipeline_mode = #tpu.pipeline_mode<synchronous>, transform_indices = @transform_0, window_bounds = array<i64: 8, 16>}, {pipeline_mode = #tpu.pipeline_mode<synchronous>, transform_indices = @transform_1, window_bounds = array<i64: 16, 48>}, {pipeline_mode = #tpu.pipeline_mode<synchronous>, transform_indices = @transform_2, window_bounds = array<i64: 1, 48>}, {pipeline_mode = #tpu.pipeline_mode<synchronous>, transform_indices = @transform_3, window_bounds = array<i64: 16, 16>}, {pipeline_mode = #tpu.pipeline_mode<synchronous>, transform_indices = @transform_4, window_bounds = array<i64: 1, 16>}, {pipeline_mode = #tpu.pipeline_mode<synchronous>, transform_indices = @transform_5, window_bounds = array<i64: 4, 2, 16>}]} {
    %c0 = arith.constant 0 : index
    %c0_0 = arith.constant 0 : index
    %0 = vector.load %arg1[%c0, %c0_0] : memref<8x16xf32, #tpu.memory_space<vmem>>, vector<8x16xf32>
    %c0_1 = arith.constant 0 : index
    %c0_2 = arith.constant 0 : index
    %1 = vector.load %arg2[%c0_1, %c0_2] : memref<16x48xf32, #tpu.memory_space<vmem>>, vector<16x48xf32>
    %cst = arith.constant dense<0.000000e+00> : vector<8x48xf32>
    %2 = tpu.matmul %0, %1, %cst {dimension_numbers = #tpu.dot_dimension_numbers<[1], [0], [0], [1], [0, 0, 1, 1], [], []>} : vector<8x16xf32>, vector<16x48xf32>, vector<8x48xf32> -> vector<8x48xf32>
    %c0_3 = arith.constant 0 : index
    %c0_4 = arith.constant 0 : index
    %3 = vector.load %arg3[%c0_3, %c0_4] : memref<1x48xf32, #tpu.memory_space<vmem>>, vector<1x48xf32>
    %4 = vector.broadcast %3 : vector<1x48xf32> to vector<8x48xf32>
    %5 = arith.addf %2, %4 : vector<8x48xf32>
    %c0_5 = arith.constant 0 : index
    %c0_6 = arith.constant 0 : index
    %6 = vector.load %arg4[%c0_5, %c0_6] : memref<16x16xf32, #tpu.memory_space<vmem>>, vector<16x16xf32>
    %c0_7 = arith.constant 0 : index
    %c0_8 = arith.constant 0 : index
    %7 = vector.load %arg5[%c0_7, %c0_8] : memref<1x16xf32, #tpu.memory_space<vmem>>, vector<1x16xf32>
    %8 = vector.extract_strided_slice %5 {offsets = [0, 0], sizes = [2, 48], strides = [1, 1]} : vector<8x48xf32> to vector<2x48xf32>
    %cst_9 = arith.constant 0.000000e+00 : f32
    %9 = vector.broadcast %cst_9 : f32 to vector<2x16xf32>
    %10 = vector.broadcast %7 : vector<1x16xf32> to vector<2x16xf32>
    %11 = arith.addf %9, %10 : vector<2x16xf32>
    %12 = vector.extract_strided_slice %8 {offsets = [0, 0], sizes = [2, 8], strides = [1, 1]} : vector<2x48xf32> to vector<2x8xf32>
    %cst_10 = arith.constant 0.353553385 : f32
    %13 = vector.broadcast %cst_10 : f32 to vector<2x8xf32>
    %14 = arith.mulf %12, %13 : vector<2x8xf32>
    %15 = vector.extract_strided_slice %8 {offsets = [0, 16], sizes = [2, 8], strides = [1, 1]} : vector<2x48xf32> to vector<2x8xf32>
    %16 = vector.extract_strided_slice %8 {offsets = [0, 32], sizes = [2, 8], strides = [1, 1]} : vector<2x48xf32> to vector<2x8xf32>
    "tpu.trace_start"() <{level = 10 : i32, message = "qd,kd->qk"}> : () -> ()
    %cst_11 = arith.constant dense<0.000000e+00> : vector<2x2xf32>
    %17 = tpu.matmul %14, %15, %cst_11 {dimension_numbers = #tpu.dot_dimension_numbers<[1], [1], [0], [0], [0, 0, 1, 0], [], []>} : vector<2x8xf32>, vector<2x8xf32>, vector<2x2xf32> -> vector<2x2xf32>
    "tpu.trace_stop"() : () -> ()
    %cst_12 = arith.constant dense<0xFF800000> : vector<2xf32>
    %18 = vector.multi_reduction <maximumf>, %17, %cst_12 [1] : vector<2x2xf32> to vector<2xf32>
    %19 = vector.shape_cast %18 : vector<2xf32> to vector<2x1xf32>
    %20 = vector.broadcast %19 : vector<2x1xf32> to vector<2x2xf32>
    %21 = arith.subf %17, %20 : vector<2x2xf32>
    %22 = math.exp %21 : vector<2x2xf32>
    %cst_13 = arith.constant dense<0.000000e+00> : vector<2xf32>
    %23 = vector.multi_reduction <add>, %22, %cst_13 [1] : vector<2x2xf32> to vector<2xf32>
    %24 = vector.shape_cast %23 : vector<2xf32> to vector<2x1xf32>
    %25 = tpu.reciprocal %24 {approx = true} : vector<2x1xf32> -> vector<2x1xf32>
    %26 = vector.broadcast %25 : vector<2x1xf32> to vector<2x2xf32>
    %27 = arith.mulf %22, %26 : vector<2x2xf32>
    %cst_14 = arith.constant dense<0.000000e+00> : vector<2x8xf32>
    %28 = tpu.matmul %27, %16, %cst_14 {dimension_numbers = #tpu.dot_dimension_numbers<[1], [0], [0], [1], [0, 0, 1, 1], [], []>} : vector<2x2xf32>, vector<2x8xf32>, vector<2x8xf32> -> vector<2x8xf32>
    %29 = vector.extract_strided_slice %6 {offsets = [0, 0], sizes = [8, 16], strides = [1, 1]} : vector<16x16xf32> to vector<8x16xf32>
    %cst_15 = arith.constant dense<0.000000e+00> : vector<2x16xf32>
    %30 = tpu.matmul %28, %29, %cst_15 {dimension_numbers = #tpu.dot_dimension_numbers<[1], [0], [0], [1], [0, 0, 1, 1], [], []>} : vector<2x8xf32>, vector<8x16xf32>, vector<2x16xf32> -> vector<2x16xf32>
    %31 = arith.addf %11, %30 : vector<2x16xf32>
    %32 = vector.extract_strided_slice %8 {offsets = [0, 8], sizes = [2, 8], strides = [1, 1]} : vector<2x48xf32> to vector<2x8xf32>
    %cst_16 = arith.constant 0.353553385 : f32
    %33 = vector.broadcast %cst_16 : f32 to vector<2x8xf32>
    %34 = arith.mulf %32, %33 : vector<2x8xf32>
    %35 = vector.extract_strided_slice %8 {offsets = [0, 24], sizes = [2, 8], strides = [1, 1]} : vector<2x48xf32> to vector<2x8xf32>
    %36 = vector.extract_strided_slice %8 {offsets = [0, 40], sizes = [2, 8], strides = [1, 1]} : vector<2x48xf32> to vector<2x8xf32>
    "tpu.trace_start"() <{level = 10 : i32, message = "qd,kd->qk"}> : () -> ()
    %cst_17 = arith.constant dense<0.000000e+00> : vector<2x2xf32>
    %37 = tpu.matmul %34, %35, %cst_17 {dimension_numbers = #tpu.dot_dimension_numbers<[1], [1], [0], [0], [0, 0, 1, 0], [], []>} : vector<2x8xf32>, vector<2x8xf32>, vector<2x2xf32> -> vector<2x2xf32>
    "tpu.trace_stop"() : () -> ()
    %cst_18 = arith.constant dense<0xFF800000> : vector<2xf32>
    %38 = vector.multi_reduction <maximumf>, %37, %cst_18 [1] : vector<2x2xf32> to vector<2xf32>
    %39 = vector.shape_cast %38 : vector<2xf32> to vector<2x1xf32>
    %40 = vector.broadcast %39 : vector<2x1xf32> to vector<2x2xf32>
    %41 = arith.subf %37, %40 : vector<2x2xf32>
    %42 = math.exp %41 : vector<2x2xf32>
    %cst_19 = arith.constant dense<0.000000e+00> : vector<2xf32>
    %43 = vector.multi_reduction <add>, %42, %cst_19 [1] : vector<2x2xf32> to vector<2xf32>
    %44 = vector.shape_cast %43 : vector<2xf32> to vector<2x1xf32>
    %45 = tpu.reciprocal %44 {approx = true} : vector<2x1xf32> -> vector<2x1xf32>
    %46 = vector.broadcast %45 : vector<2x1xf32> to vector<2x2xf32>
    %47 = arith.mulf %42, %46 : vector<2x2xf32>
    %cst_20 = arith.constant dense<0.000000e+00> : vector<2x8xf32>
    %48 = tpu.matmul %47, %36, %cst_20 {dimension_numbers = #tpu.dot_dimension_numbers<[1], [0], [0], [1], [0, 0, 1, 1], [], []>} : vector<2x2xf32>, vector<2x8xf32>, vector<2x8xf32> -> vector<2x8xf32>
    %49 = vector.extract_strided_slice %6 {offsets = [8, 0], sizes = [8, 16], strides = [1, 1]} : vector<16x16xf32> to vector<8x16xf32>
    %cst_21 = arith.constant dense<0.000000e+00> : vector<2x16xf32>
    %50 = tpu.matmul %48, %49, %cst_21 {dimension_numbers = #tpu.dot_dimension_numbers<[1], [0], [0], [1], [0, 0, 1, 1], [], []>} : vector<2x8xf32>, vector<8x16xf32>, vector<2x16xf32> -> vector<2x16xf32>
    %51 = arith.addf %31, %50 : vector<2x16xf32>
    %c0_22 = arith.constant 0 : index
    %c0_23 = arith.constant 0 : index
    %c0_24 = arith.constant 0 : index
    %52 = vector.load %arg6[%c0_22, %c0_23, %c0_24] : memref<4x2x16xf32, #tpu.memory_space<vmem>>, vector<1x2x16xf32>
    %53 = vector.shape_cast %52 : vector<1x2x16xf32> to vector<2x16xf32>
    %54 = vector.shape_cast %51 : vector<2x16xf32> to vector<1x2x16xf32>
    tpu.vector_store %arg6[%c0_22, %c0_23, %c0_24], %54 {strides = array<i32>} : memref<4x2x16xf32, #tpu.memory_space<vmem>>, vector<1x2x16xf32>,
    %55 = vector.extract_strided_slice %5 {offsets = [2, 0], sizes = [2, 48], strides = [1, 1]} : vector<8x48xf32> to vector<2x48xf32>
    %cst_25 = arith.constant 0.000000e+00 : f32
    %56 = vector.broadcast %cst_25 : f32 to vector<2x16xf32>
    %57 = vector.broadcast %7 : vector<1x16xf32> to vector<2x16xf32>
    %58 = arith.addf %56, %57 : vector<2x16xf32>
    %59 = vector.extract_strided_slice %55 {offsets = [0, 0], sizes = [2, 8], strides = [1, 1]} : vector<2x48xf32> to vector<2x8xf32>
    %cst_26 = arith.constant 0.353553385 : f32
    %60 = vector.broadcast %cst_26 : f32 to vector<2x8xf32>
    %61 = arith.mulf %59, %60 : vector<2x8xf32>
    %62 = vector.extract_strided_slice %55 {offsets = [0, 16], sizes = [2, 8], strides = [1, 1]} : vector<2x48xf32> to vector<2x8xf32>
    %63 = vector.extract_strided_slice %55 {offsets = [0, 32], sizes = [2, 8], strides = [1, 1]} : vector<2x48xf32> to vector<2x8xf32>
    "tpu.trace_start"() <{level = 10 : i32, message = "qd,kd->qk"}> : () -> ()
    %cst_27 = arith.constant dense<0.000000e+00> : vector<2x2xf32>
    %64 = tpu.matmul %61, %62, %cst_27 {dimension_numbers = #tpu.dot_dimension_numbers<[1], [1], [0], [0], [0, 0, 1, 0], [], []>} : vector<2x8xf32>, vector<2x8xf32>, vector<2x2xf32> -> vector<2x2xf32>
    "tpu.trace_stop"() : () -> ()
    %cst_28 = arith.constant dense<0xFF800000> : vector<2xf32>
    %65 = vector.multi_reduction <maximumf>, %64, %cst_28 [1] : vector<2x2xf32> to vector<2xf32>
    %66 = vector.shape_cast %65 : vector<2xf32> to vector<2x1xf32>
    %67 = vector.broadcast %66 : vector<2x1xf32> to vector<2x2xf32>
    %68 = arith.subf %64, %67 : vector<2x2xf32>
    %69 = math.exp %68 : vector<2x2xf32>
    %cst_29 = arith.constant dense<0.000000e+00> : vector<2xf32>
    %70 = vector.multi_reduction <add>, %69, %cst_29 [1] : vector<2x2xf32> to vector<2xf32>
    %71 = vector.shape_cast %70 : vector<2xf32> to vector<2x1xf32>
    %72 = tpu.reciprocal %71 {approx = true} : vector<2x1xf32> -> vector<2x1xf32>
    %73 = vector.broadcast %72 : vector<2x1xf32> to vector<2x2xf32>
    %74 = arith.mulf %69, %73 : vector<2x2xf32>
    %cst_30 = arith.constant dense<0.000000e+00> : vector<2x8xf32>
    %75 = tpu.matmul %74, %63, %cst_30 {dimension_numbers = #tpu.dot_dimension_numbers<[1], [0], [0], [1], [0, 0, 1, 1], [], []>} : vector<2x2xf32>, vector<2x8xf32>, vector<2x8xf32> -> vector<2x8xf32>
    %76 = vector.extract_strided_slice %6 {offsets = [0, 0], sizes = [8, 16], strides = [1, 1]} : vector<16x16xf32> to vector<8x16xf32>
    %cst_31 = arith.constant dense<0.000000e+00> : vector<2x16xf32>
    %77 = tpu.matmul %75, %76, %cst_31 {dimension_numbers = #tpu.dot_dimension_numbers<[1], [0], [0], [1], [0, 0, 1, 1], [], []>} : vector<2x8xf32>, vector<8x16xf32>, vector<2x16xf32> -> vector<2x16xf32>
    %78 = arith.addf %58, %77 : vector<2x16xf32>
    %79 = vector.extract_strided_slice %55 {offsets = [0, 8], sizes = [2, 8], strides = [1, 1]} : vector<2x48xf32> to vector<2x8xf32>
    %cst_32 = arith.constant 0.353553385 : f32
    %80 = vector.broadcast %cst_32 : f32 to vector<2x8xf32>
    %81 = arith.mulf %79, %80 : vector<2x8xf32>
    %82 = vector.extract_strided_slice %55 {offsets = [0, 24], sizes = [2, 8], strides = [1, 1]} : vector<2x48xf32> to vector<2x8xf32>
    %83 = vector.extract_strided_slice %55 {offsets = [0, 40], sizes = [2, 8], strides = [1, 1]} : vector<2x48xf32> to vector<2x8xf32>
    "tpu.trace_start"() <{level = 10 : i32, message = "qd,kd->qk"}> : () -> ()
    %cst_33 = arith.constant dense<0.000000e+00> : vector<2x2xf32>
    %84 = tpu.matmul %81, %82, %cst_33 {dimension_numbers = #tpu.dot_dimension_numbers<[1], [1], [0], [0], [0, 0, 1, 0], [], []>} : vector<2x8xf32>, vector<2x8xf32>, vector<2x2xf32> -> vector<2x2xf32>
    "tpu.trace_stop"() : () -> ()
    %cst_34 = arith.constant dense<0xFF800000> : vector<2xf32>
    %85 = vector.multi_reduction <maximumf>, %84, %cst_34 [1] : vector<2x2xf32> to vector<2xf32>
    %86 = vector.shape_cast %85 : vector<2xf32> to vector<2x1xf32>
    %87 = vector.broadcast %86 : vector<2x1xf32> to vector<2x2xf32>
    %88 = arith.subf %84, %87 : vector<2x2xf32>
    %89 = math.exp %88 : vector<2x2xf32>
    %cst_35 = arith.constant dense<0.000000e+00> : vector<2xf32>
    %90 = vector.multi_reduction <add>, %89, %cst_35 [1] : vector<2x2xf32> to vector<2xf32>
    %91 = vector.shape_cast %90 : vector<2xf32> to vector<2x1xf32>
    %92 = tpu.reciprocal %91 {approx = true} : vector<2x1xf32> -> vector<2x1xf32>
    %93 = vector.broadcast %92 : vector<2x1xf32> to vector<2x2xf32>
    %94 = arith.mulf %89, %93 : vector<2x2xf32>
    %cst_36 = arith.constant dense<0.000000e+00> : vector<2x8xf32>
    %95 = tpu.matmul %94, %83, %cst_36 {dimension_numbers = #tpu.dot_dimension_numbers<[1], [0], [0], [1], [0, 0, 1, 1], [], []>} : vector<2x2xf32>, vector<2x8xf32>, vector<2x8xf32> -> vector<2x8xf32>
    %96 = vector.extract_strided_slice %6 {offsets = [8, 0], sizes = [8, 16], strides = [1, 1]} : vector<16x16xf32> to vector<8x16xf32>
    %cst_37 = arith.constant dense<0.000000e+00> : vector<2x16xf32>
    %97 = tpu.matmul %95, %96, %cst_37 {dimension_numbers = #tpu.dot_dimension_numbers<[1], [0], [0], [1], [0, 0, 1, 1], [], []>} : vector<2x8xf32>, vector<8x16xf32>, vector<2x16xf32> -> vector<2x16xf32>
    %98 = arith.addf %78, %97 : vector<2x16xf32>
    %c1 = arith.constant 1 : index
    %c0_38 = arith.constant 0 : index
    %c0_39 = arith.constant 0 : index
    %99 = vector.load %arg6[%c1, %c0_38, %c0_39] : memref<4x2x16xf32, #tpu.memory_space<vmem>>, vector<1x2x16xf32>
    %100 = vector.shape_cast %99 : vector<1x2x16xf32> to vector<2x16xf32>
    %101 = vector.shape_cast %98 : vector<2x16xf32> to vector<1x2x16xf32>
    tpu.vector_store %arg6[%c1, %c0_38, %c0_39], %101 {strides = array<i32>} : memref<4x2x16xf32, #tpu.memory_space<vmem>>, vector<1x2x16xf32>,
    %102 = vector.extract_strided_slice %5 {offsets = [4, 0], sizes = [2, 48], strides = [1, 1]} : vector<8x48xf32> to vector<2x48xf32>
    %cst_40 = arith.constant 0.000000e+00 : f32
    %103 = vector.broadcast %cst_40 : f32 to vector<2x16xf32>
    %104 = vector.broadcast %7 : vector<1x16xf32> to vector<2x16xf32>
    %105 = arith.addf %103, %104 : vector<2x16xf32>
    %106 = vector.extract_strided_slice %102 {offsets = [0, 0], sizes = [2, 8], strides = [1, 1]} : vector<2x48xf32> to vector<2x8xf32>
    %cst_41 = arith.constant 0.353553385 : f32
    %107 = vector.broadcast %cst_41 : f32 to vector<2x8xf32>
    %108 = arith.mulf %106, %107 : vector<2x8xf32>
    %109 = vector.extract_strided_slice %102 {offsets = [0, 16], sizes = [2, 8], strides = [1, 1]} : vector<2x48xf32> to vector<2x8xf32>
    %110 = vector.extract_strided_slice %102 {offsets = [0, 32], sizes = [2, 8], strides = [1, 1]} : vector<2x48xf32> to vector<2x8xf32>
    "tpu.trace_start"() <{level = 10 : i32, message = "qd,kd->qk"}> : () -> ()
    %cst_42 = arith.constant dense<0.000000e+00> : vector<2x2xf32>
    %111 = tpu.matmul %108, %109, %cst_42 {dimension_numbers = #tpu.dot_dimension_numbers<[1], [1], [0], [0], [0, 0, 1, 0], [], []>} : vector<2x8xf32>, vector<2x8xf32>, vector<2x2xf32> -> vector<2x2xf32>
    "tpu.trace_stop"() : () -> ()
    %cst_43 = arith.constant dense<0xFF800000> : vector<2xf32>
    %112 = vector.multi_reduction <maximumf>, %111, %cst_43 [1] : vector<2x2xf32> to vector<2xf32>
    %113 = vector.shape_cast %112 : vector<2xf32> to vector<2x1xf32>
    %114 = vector.broadcast %113 : vector<2x1xf32> to vector<2x2xf32>
    %115 = arith.subf %111, %114 : vector<2x2xf32>
    %116 = math.exp %115 : vector<2x2xf32>
    %cst_44 = arith.constant dense<0.000000e+00> : vector<2xf32>
    %117 = vector.multi_reduction <add>, %116, %cst_44 [1] : vector<2x2xf32> to vector<2xf32>
    %118 = vector.shape_cast %117 : vector<2xf32> to vector<2x1xf32>
    %119 = tpu.reciprocal %118 {approx = true} : vector<2x1xf32> -> vector<2x1xf32>
    %120 = vector.broadcast %119 : vector<2x1xf32> to vector<2x2xf32>
    %121 = arith.mulf %116, %120 : vector<2x2xf32>
    %cst_45 = arith.constant dense<0.000000e+00> : vector<2x8xf32>
    %122 = tpu.matmul %121, %110, %cst_45 {dimension_numbers = #tpu.dot_dimension_numbers<[1], [0], [0], [1], [0, 0, 1, 1], [], []>} : vector<2x2xf32>, vector<2x8xf32>, vector<2x8xf32> -> vector<2x8xf32>
    %123 = vector.extract_strided_slice %6 {offsets = [0, 0], sizes = [8, 16], strides = [1, 1]} : vector<16x16xf32> to vector<8x16xf32>
    %cst_46 = arith.constant dense<0.000000e+00> : vector<2x16xf32>
    %124 = tpu.matmul %122, %123, %cst_46 {dimension_numbers = #tpu.dot_dimension_numbers<[1], [0], [0], [1], [0, 0, 1, 1], [], []>} : vector<2x8xf32>, vector<8x16xf32>, vector<2x16xf32> -> vector<2x16xf32>
    %125 = arith.addf %105, %124 : vector<2x16xf32>
    %126 = vector.extract_strided_slice %102 {offsets = [0, 8], sizes = [2, 8], strides = [1, 1]} : vector<2x48xf32> to vector<2x8xf32>
    %cst_47 = arith.constant 0.353553385 : f32
    %127 = vector.broadcast %cst_47 : f32 to vector<2x8xf32>
    %128 = arith.mulf %126, %127 : vector<2x8xf32>
    %129 = vector.extract_strided_slice %102 {offsets = [0, 24], sizes = [2, 8], strides = [1, 1]} : vector<2x48xf32> to vector<2x8xf32>
    %130 = vector.extract_strided_slice %102 {offsets = [0, 40], sizes = [2, 8], strides = [1, 1]} : vector<2x48xf32> to vector<2x8xf32>
    "tpu.trace_start"() <{level = 10 : i32, message = "qd,kd->qk"}> : () -> ()
    %cst_48 = arith.constant dense<0.000000e+00> : vector<2x2xf32>
    %131 = tpu.matmul %128, %129, %cst_48 {dimension_numbers = #tpu.dot_dimension_numbers<[1], [1], [0], [0], [0, 0, 1, 0], [], []>} : vector<2x8xf32>, vector<2x8xf32>, vector<2x2xf32> -> vector<2x2xf32>
    "tpu.trace_stop"() : () -> ()
    %cst_49 = arith.constant dense<0xFF800000> : vector<2xf32>
    %132 = vector.multi_reduction <maximumf>, %131, %cst_49 [1] : vector<2x2xf32> to vector<2xf32>
    %133 = vector.shape_cast %132 : vector<2xf32> to vector<2x1xf32>
    %134 = vector.broadcast %133 : vector<2x1xf32> to vector<2x2xf32>
    %135 = arith.subf %131, %134 : vector<2x2xf32>
    %136 = math.exp %135 : vector<2x2xf32>
    %cst_50 = arith.constant dense<0.000000e+00> : vector<2xf32>
    %137 = vector.multi_reduction <add>, %136, %cst_50 [1] : vector<2x2xf32> to vector<2xf32>
    %138 = vector.shape_cast %137 : vector<2xf32> to vector<2x1xf32>
    %139 = tpu.reciprocal %138 {approx = true} : vector<2x1xf32> -> vector<2x1xf32>
    %140 = vector.broadcast %139 : vector<2x1xf32> to vector<2x2xf32>
    %141 = arith.mulf %136, %140 : vector<2x2xf32>
    %cst_51 = arith.constant dense<0.000000e+00> : vector<2x8xf32>
    %142 = tpu.matmul %141, %130, %cst_51 {dimension_numbers = #tpu.dot_dimension_numbers<[1], [0], [0], [1], [0, 0, 1, 1], [], []>} : vector<2x2xf32>, vector<2x8xf32>, vector<2x8xf32> -> vector<2x8xf32>
    %143 = vector.extract_strided_slice %6 {offsets = [8, 0], sizes = [8, 16], strides = [1, 1]} : vector<16x16xf32> to vector<8x16xf32>
    %cst_52 = arith.constant dense<0.000000e+00> : vector<2x16xf32>
    %144 = tpu.matmul %142, %143, %cst_52 {dimension_numbers = #tpu.dot_dimension_numbers<[1], [0], [0], [1], [0, 0, 1, 1], [], []>} : vector<2x8xf32>, vector<8x16xf32>, vector<2x16xf32> -> vector<2x16xf32>
    %145 = arith.addf %125, %144 : vector<2x16xf32>
    %c2 = arith.constant 2 : index
    %c0_53 = arith.constant 0 : index
    %c0_54 = arith.constant 0 : index
    %146 = vector.load %arg6[%c2, %c0_53, %c0_54] : memref<4x2x16xf32, #tpu.memory_space<vmem>>, vector<1x2x16xf32>
    %147 = vector.shape_cast %146 : vector<1x2x16xf32> to vector<2x16xf32>
    %148 = vector.shape_cast %145 : vector<2x16xf32> to vector<1x2x16xf32>
    tpu.vector_store %arg6[%c2, %c0_53, %c0_54], %148 {strides = array<i32>} : memref<4x2x16xf32, #tpu.memory_space<vmem>>, vector<1x2x16xf32>,
    %149 = vector.extract_strided_slice %5 {offsets = [6, 0], sizes = [2, 48], strides = [1, 1]} : vector<8x48xf32> to vector<2x48xf32>
    %cst_55 = arith.constant 0.000000e+00 : f32
    %150 = vector.broadcast %cst_55 : f32 to vector<2x16xf32>
    %151 = vector.broadcast %7 : vector<1x16xf32> to vector<2x16xf32>
    %152 = arith.addf %150, %151 : vector<2x16xf32>
    %153 = vector.extract_strided_slice %149 {offsets = [0, 0], sizes = [2, 8], strides = [1, 1]} : vector<2x48xf32> to vector<2x8xf32>
    %cst_56 = arith.constant 0.353553385 : f32
    %154 = vector.broadcast %cst_56 : f32 to vector<2x8xf32>
    %155 = arith.mulf %153, %154 : vector<2x8xf32>
    %156 = vector.extract_strided_slice %149 {offsets = [0, 16], sizes = [2, 8], strides = [1, 1]} : vector<2x48xf32> to vector<2x8xf32>
    %157 = vector.extract_strided_slice %149 {offsets = [0, 32], sizes = [2, 8], strides = [1, 1]} : vector<2x48xf32> to vector<2x8xf32>
    "tpu.trace_start"() <{level = 10 : i32, message = "qd,kd->qk"}> : () -> ()
    %cst_57 = arith.constant dense<0.000000e+00> : vector<2x2xf32>
    %158 = tpu.matmul %155, %156, %cst_57 {dimension_numbers = #tpu.dot_dimension_numbers<[1], [1], [0], [0], [0, 0, 1, 0], [], []>} : vector<2x8xf32>, vector<2x8xf32>, vector<2x2xf32> -> vector<2x2xf32>
    "tpu.trace_stop"() : () -> ()
    %cst_58 = arith.constant dense<0xFF800000> : vector<2xf32>
    %159 = vector.multi_reduction <maximumf>, %158, %cst_58 [1] : vector<2x2xf32> to vector<2xf32>
    %160 = vector.shape_cast %159 : vector<2xf32> to vector<2x1xf32>
    %161 = vector.broadcast %160 : vector<2x1xf32> to vector<2x2xf32>
    %162 = arith.subf %158, %161 : vector<2x2xf32>
    %163 = math.exp %162 : vector<2x2xf32>
    %cst_59 = arith.constant dense<0.000000e+00> : vector<2xf32>
    %164 = vector.multi_reduction <add>, %163, %cst_59 [1] : vector<2x2xf32> to vector<2xf32>
    %165 = vector.shape_cast %164 : vector<2xf32> to vector<2x1xf32>
    %166 = tpu.reciprocal %165 {approx = true} : vector<2x1xf32> -> vector<2x1xf32>
    %167 = vector.broadcast %166 : vector<2x1xf32> to vector<2x2xf32>
    %168 = arith.mulf %163, %167 : vector<2x2xf32>
    %cst_60 = arith.constant dense<0.000000e+00> : vector<2x8xf32>
    %169 = tpu.matmul %168, %157, %cst_60 {dimension_numbers = #tpu.dot_dimension_numbers<[1], [0], [0], [1], [0, 0, 1, 1], [], []>} : vector<2x2xf32>, vector<2x8xf32>, vector<2x8xf32> -> vector<2x8xf32>
    %170 = vector.extract_strided_slice %6 {offsets = [0, 0], sizes = [8, 16], strides = [1, 1]} : vector<16x16xf32> to vector<8x16xf32>
    %cst_61 = arith.constant dense<0.000000e+00> : vector<2x16xf32>
    %171 = tpu.matmul %169, %170, %cst_61 {dimension_numbers = #tpu.dot_dimension_numbers<[1], [0], [0], [1], [0, 0, 1, 1], [], []>} : vector<2x8xf32>, vector<8x16xf32>, vector<2x16xf32> -> vector<2x16xf32>
    %172 = arith.addf %152, %171 : vector<2x16xf32>
    %173 = vector.extract_strided_slice %149 {offsets = [0, 8], sizes = [2, 8], strides = [1, 1]} : vector<2x48xf32> to vector<2x8xf32>
    %cst_62 = arith.constant 0.353553385 : f32
    %174 = vector.broadcast %cst_62 : f32 to vector<2x8xf32>
    %175 = arith.mulf %173, %174 : vector<2x8xf32>
    %176 = vector.extract_strided_slice %149 {offsets = [0, 24], sizes = [2, 8], strides = [1, 1]} : vector<2x48xf32> to vector<2x8xf32>
    %177 = vector.extract_strided_slice %149 {offsets = [0, 40], sizes = [2, 8], strides = [1, 1]} : vector<2x48xf32> to vector<2x8xf32>
    "tpu.trace_start"() <{level = 10 : i32, message = "qd,kd->qk"}> : () -> ()
    %cst_63 = arith.constant dense<0.000000e+00> : vector<2x2xf32>
    %178 = tpu.matmul %175, %176, %cst_63 {dimension_numbers = #tpu.dot_dimension_numbers<[1], [1], [0], [0], [0, 0, 1, 0], [], []>} : vector<2x8xf32>, vector<2x8xf32>, vector<2x2xf32> -> vector<2x2xf32>
    "tpu.trace_stop"() : () -> ()
    %cst_64 = arith.constant dense<0xFF800000> : vector<2xf32>
    %179 = vector.multi_reduction <maximumf>, %178, %cst_64 [1] : vector<2x2xf32> to vector<2xf32>
    %180 = vector.shape_cast %179 : vector<2xf32> to vector<2x1xf32>
    %181 = vector.broadcast %180 : vector<2x1xf32> to vector<2x2xf32>
    %182 = arith.subf %178, %181 : vector<2x2xf32>
    %183 = math.exp %182 : vector<2x2xf32>
    %cst_65 = arith.constant dense<0.000000e+00> : vector<2xf32>
    %184 = vector.multi_reduction <add>, %183, %cst_65 [1] : vector<2x2xf32> to vector<2xf32>
    %185 = vector.shape_cast %184 : vector<2xf32> to vector<2x1xf32>
    %186 = tpu.reciprocal %185 {approx = true} : vector<2x1xf32> -> vector<2x1xf32>
    %187 = vector.broadcast %186 : vector<2x1xf32> to vector<2x2xf32>
    %188 = arith.mulf %183, %187 : vector<2x2xf32>
    %cst_66 = arith.constant dense<0.000000e+00> : vector<2x8xf32>
    %189 = tpu.matmul %188, %177, %cst_66 {dimension_numbers = #tpu.dot_dimension_numbers<[1], [0], [0], [1], [0, 0, 1, 1], [], []>} : vector<2x2xf32>, vector<2x8xf32>, vector<2x8xf32> -> vector<2x8xf32>
    %190 = vector.extract_strided_slice %6 {offsets = [8, 0], sizes = [8, 16], strides = [1, 1]} : vector<16x16xf32> to vector<8x16xf32>
    %cst_67 = arith.constant dense<0.000000e+00> : vector<2x16xf32>
    %191 = tpu.matmul %189, %190, %cst_67 {dimension_numbers = #tpu.dot_dimension_numbers<[1], [0], [0], [1], [0, 0, 1, 1], [], []>} : vector<2x8xf32>, vector<8x16xf32>, vector<2x16xf32> -> vector<2x16xf32>
    %192 = arith.addf %172, %191 : vector<2x16xf32>
    %c3 = arith.constant 3 : index
    %c0_68 = arith.constant 0 : index
    %c0_69 = arith.constant 0 : index
    %193 = vector.load %arg6[%c3, %c0_68, %c0_69] : memref<4x2x16xf32, #tpu.memory_space<vmem>>, vector<1x2x16xf32>
    %194 = vector.shape_cast %193 : vector<1x2x16xf32> to vector<2x16xf32>
    %195 = vector.shape_cast %192 : vector<2x16xf32> to vector<1x2x16xf32>
    tpu.vector_store %arg6[%c3, %c0_68, %c0_69], %195 {strides = array<i32>} : memref<4x2x16xf32, #tpu.memory_space<vmem>>, vector<1x2x16xf32>,
    return
  }
  func.func @transform_0(%arg0: i32) -> (i32, i32) {
    %c0_i32 = arith.constant 0 : i32
    %c0_i32_0 = arith.constant 0 : i32
    %c0_i32_1 = arith.constant 0 : i32
    return %c0_i32, %c0_i32_0 : i32, i32
  }
  func.func @transform_1(%arg0: i32) -> (i32, i32) {
    %c0_i32 = arith.constant 0 : i32
    %c0_i32_0 = arith.constant 0 : i32
    %c0_i32_1 = arith.constant 0 : i32
    return %c0_i32, %c0_i32_0 : i32, i32
  }
  func.func @transform_2(%arg0: i32) -> (i32, i32) {
    %c0_i32 = arith.constant 0 : i32
    %c0_i32_0 = arith.constant 0 : i32
    %c0_i32_1 = arith.constant 0 : i32
    return %c0_i32, %c0_i32_0 : i32, i32
  }
  func.func @transform_3(%arg0: i32) -> (i32, i32) {
    %c0_i32 = arith.constant 0 : i32
    %c0_i32_0 = arith.constant 0 : i32
    %c0_i32_1 = arith.constant 0 : i32
    return %c0_i32, %c0_i32_0 : i32, i32
  }
  func.func @transform_4(%arg0: i32) -> (i32, i32) {
    %c0_i32 = arith.constant 0 : i32
    %c0_i32_0 = arith.constant 0 : i32
    %c0_i32_1 = arith.constant 0 : i32
    return %c0_i32, %c0_i32_0 : i32, i32
  }
  func.func @transform_5(%arg0: i32) -> (i32, i32, i32) {
    %c0_i32 = arith.constant 0 : i32
    %c0_i32_0 = arith.constant 0 : i32
    %c0_i32_1 = arith.constant 0 : i32
    %c0_i32_2 = arith.constant 0 : i32
    return %c0_i32, %c0_i32_0, %c0_i32_1 : i32, i32, i32
  }
}

module attributes {stable_mosaic.version = 11 : i64} {
  func.func @_subgraph_stack_kernel(%arg0: i32, %arg1: memref<8x8x4xf32, #tpu.memory_space<vmem>>, %arg2: memref<4x64xf32, #tpu.memory_space<vmem>>, %arg3: memref<1x64xf32, #tpu.memory_space<vmem>>, %arg4: memref<64x4xf32, #tpu.memory_space<vmem>>, %arg5: memref<1x4xf32, #tpu.memory_space<vmem>>, %arg6: memref<4x8xf32, #tpu.memory_space<vmem>>, %arg7: memref<4x8xf32, #tpu.memory_space<vmem>>, %arg8: memref<1x8xf32, #tpu.memory_space<vmem>>, %arg9: memref<8x64xf32, #tpu.memory_space<vmem>>, %arg10: memref<1x64xf32, #tpu.memory_space<vmem>>, %arg11: memref<64x8xf32, #tpu.memory_space<vmem>>, %arg12: memref<1x8xf32, #tpu.memory_space<vmem>>, %arg13: memref<8x16xf32, #tpu.memory_space<vmem>>, %arg14: memref<8x16xf32, #tpu.memory_space<vmem>>, %arg15: memref<1x16xf32, #tpu.memory_space<vmem>>, %arg16: memref<8x16xf32, #tpu.memory_space<vmem>>) attributes {dimension_semantics = [#tpu.dimension_semantics<parallel>], iteration_bounds = array<i64: 1>, scalar_prefetch = 0 : i64, scratch_operands = 0 : i64, tpu.core_type = #tpu.core_type<tc>, window_params = [{transform_indices = @transform_0, window_bounds = array<i64: 8, 8, 4>}, {pipeline_mode = #tpu.pipeline_mode<synchronous>, transform_indices = @transform_1, window_bounds = array<i64: 4, 64>}, {pipeline_mode = #tpu.pipeline_mode<synchronous>, transform_indices = @transform_2, window_bounds = array<i64: 1, 64>}, {pipeline_mode = #tpu.pipeline_mode<synchronous>, transform_indices = @transform_3, window_bounds = array<i64: 64, 4>}, {pipeline_mode = #tpu.pipeline_mode<synchronous>, transform_indices = @transform_4, window_bounds = array<i64: 1, 4>}, {pipeline_mode = #tpu.pipeline_mode<synchronous>, transform_indices = @transform_5, window_bounds = array<i64: 4, 8>}, {pipeline_mode = #tpu.pipeline_mode<synchronous>, transform_indices = @transform_6, window_bounds = array<i64: 4, 8>}, {pipeline_mode = #tpu.pipeline_mode<synchronous>, transform_indices = @transform_7, window_bounds = array<i64: 1, 8>}, {pipeline_mode = #tpu.pipeline_mode<synchronous>, transform_indices = @transform_8, window_bounds = array<i64: 8, 64>}, {pipeline_mode = #tpu.pipeline_mode<synchronous>, transform_indices = @transform_9, window_bounds = array<i64: 1, 64>}, {pipeline_mode = #tpu.pipeline_mode<synchronous>, transform_indices = @transform_10, window_bounds = array<i64: 64, 8>}, {pipeline_mode = #tpu.pipeline_mode<synchronous>, transform_indices = @transform_11, window_bounds = array<i64: 1, 8>}, {pipeline_mode = #tpu.pipeline_mode<synchronous>, transform_indices = @transform_12, window_bounds = array<i64: 8, 16>}, {pipeline_mode = #tpu.pipeline_mode<synchronous>, transform_indices = @transform_13, window_bounds = array<i64: 8, 16>}, {pipeline_mode = #tpu.pipeline_mode<synchronous>, transform_indices = @transform_14, window_bounds = array<i64: 1, 16>}, {transform_indices = @transform_15, window_bounds = array<i64: 8, 16>}]} {
    %c0 = arith.constant 0 : index
    %c0_0 = arith.constant 0 : index
    %c0_1 = arith.constant 0 : index
    %0 = vector.load %arg1[%c0, %c0_0, %c0_1] : memref<8x8x4xf32, #tpu.memory_space<vmem>>, vector<8x8x4xf32>
    %1 = vector.shape_cast %0 : vector<8x8x4xf32> to vector<64x4xf32>
    %c0_2 = arith.constant 0 : index
    %c0_3 = arith.constant 0 : index
    %2 = vector.load %arg2[%c0_2, %c0_3] : memref<4x64xf32, #tpu.memory_space<vmem>>, vector<4x64xf32>
    %cst = arith.constant dense<0.000000e+00> : vector<64x64xf32>
    %3 = tpu.matmul %1, %2, %cst {dimension_numbers = #tpu.dot_dimension_numbers<[1], [0], [0], [1], [0, 0, 1, 1], [], []>} : vector<64x4xf32>, vector<4x64xf32>, vector<64x64xf32> -> vector<64x64xf32>
    %c0_4 = arith.constant 0 : index
    %c0_5 = arith.constant 0 : index
    %4 = vector.load %arg3[%c0_4, %c0_5] : memref<1x64xf32, #tpu.memory_space<vmem>>, vector<1x64xf32>
    %5 = vector.broadcast %4 : vector<1x64xf32> to vector<64x64xf32>
    %6 = arith.addf %3, %5 : vector<64x64xf32>
    %cst_6 = arith.constant 0.000000e+00 : f32
    %7 = vector.broadcast %cst_6 : f32 to vector<64x64xf32>
    %8 = arith.maximumf %6, %7 : vector<64x64xf32>
    %c0_7 = arith.constant 0 : index
    %c0_8 = arith.constant 0 : index
    %9 = vector.load %arg4[%c0_7, %c0_8] : memref<64x4xf32, #tpu.memory_space<vmem>>, vector<64x4xf32>
    %cst_9 = arith.constant dense<0.000000e+00> : vector<64x4xf32>
    %10 = tpu.matmul %8, %9, %cst_9 {dimension_numbers = #tpu.dot_dimension_numbers<[1], [0], [0], [1], [0, 0, 1, 1], [], []>} : vector<64x64xf32>, vector<64x4xf32>, vector<64x4xf32> -> vector<64x4xf32>
    %c0_10 = arith.constant 0 : index
    %c0_11 = arith.constant 0 : index
    %11 = vector.load %arg5[%c0_10, %c0_11] : memref<1x4xf32, #tpu.memory_space<vmem>>, vector<1x4xf32>
    %12 = vector.broadcast %11 : vector<1x4xf32> to vector<64x4xf32>
    %13 = arith.addf %10, %12 : vector<64x4xf32>
    %14 = vector.shape_cast %13 : vector<64x4xf32> to vector<8x8x4xf32>
    %cst_12 = arith.constant dense<0xFF800000> : vector<8x4xf32>
    %15 = vector.multi_reduction <maximumf>, %14, %cst_12 [1] : vector<8x8x4xf32> to vector<8x4xf32>
    %c0_13 = arith.constant 0 : index
    %c0_14 = arith.constant 0 : index
    %16 = vector.load %arg6[%c0_13, %c0_14] : memref<4x8xf32, #tpu.memory_space<vmem>>, vector<4x8xf32>
    %cst_15 = arith.constant dense<0.000000e+00> : vector<64x8xf32>
    %17 = tpu.matmul %13, %16, %cst_15 {dimension_numbers = #tpu.dot_dimension_numbers<[1], [0], [0], [1], [0, 0, 1, 1], [], []>} : vector<64x4xf32>, vector<4x8xf32>, vector<64x8xf32> -> vector<64x8xf32>
    %18 = vector.shape_cast %17 : vector<64x8xf32> to vector<8x8x8xf32>
    %c0_16 = arith.constant 0 : index
    %c0_17 = arith.constant 0 : index
    %19 = vector.load %arg7[%c0_16, %c0_17] : memref<4x8xf32, #tpu.memory_space<vmem>>, vector<4x8xf32>
    %cst_18 = arith.constant dense<0.000000e+00> : vector<8x8xf32>
    %20 = tpu.matmul %15, %19, %cst_18 {dimension_numbers = #tpu.dot_dimension_numbers<[1], [0], [0], [1], [0, 0, 1, 1], [], []>} : vector<8x4xf32>, vector<4x8xf32>, vector<8x8xf32> -> vector<8x8xf32>
    %21 = vector.shape_cast %20 : vector<8x8xf32> to vector<8x1x8xf32>
    %22 = vector.broadcast %21 : vector<8x1x8xf32> to vector<8x8x8xf32>
    %23 = arith.addf %18, %22 : vector<8x8x8xf32>
    %c0_19 = arith.constant 0 : index
    %c0_20 = arith.constant 0 : index
    %24 = vector.load %arg8[%c0_19, %c0_20] : memref<1x8xf32, #tpu.memory_space<vmem>>, vector<1x8xf32>
    %25 = vector.shape_cast %24 : vector<1x8xf32> to vector<1x1x8xf32>
    %26 = vector.broadcast %25 : vector<1x1x8xf32> to vector<8x8x8xf32>
    %27 = arith.addf %23, %26 : vector<8x8x8xf32>
    %28 = vector.shape_cast %27 : vector<8x8x8xf32> to vector<64x8xf32>
    %c0_21 = arith.constant 0 : index
    %c0_22 = arith.constant 0 : index
    %29 = vector.load %arg9[%c0_21, %c0_22] : memref<8x64xf32, #tpu.memory_space<vmem>>, vector<8x64xf32>
    %cst_23 = arith.constant dense<0.000000e+00> : vector<64x64xf32>
    %30 = tpu.matmul %28, %29, %cst_23 {dimension_numbers = #tpu.dot_dimension_numbers<[1], [0], [0], [1], [0, 0, 1, 1], [], []>} : vector<64x8xf32>, vector<8x64xf32>, vector<64x64xf32> -> vector<64x64xf32>
    %c0_24 = arith.constant 0 : index
    %c0_25 = arith.constant 0 : index
    %31 = vector.load %arg10[%c0_24, %c0_25] : memref<1x64xf32, #tpu.memory_space<vmem>>, vector<1x64xf32>
    %32 = vector.broadcast %31 : vector<1x64xf32> to vector<64x64xf32>
    %33 = arith.addf %30, %32 : vector<64x64xf32>
    %cst_26 = arith.constant 0.000000e+00 : f32
    %34 = vector.broadcast %cst_26 : f32 to vector<64x64xf32>
    %35 = arith.maximumf %33, %34 : vector<64x64xf32>
    %c0_27 = arith.constant 0 : index
    %c0_28 = arith.constant 0 : index
    %36 = vector.load %arg11[%c0_27, %c0_28] : memref<64x8xf32, #tpu.memory_space<vmem>>, vector<64x8xf32>
    %cst_29 = arith.constant dense<0.000000e+00> : vector<64x8xf32>
    %37 = tpu.matmul %35, %36, %cst_29 {dimension_numbers = #tpu.dot_dimension_numbers<[1], [0], [0], [1], [0, 0, 1, 1], [], []>} : vector<64x64xf32>, vector<64x8xf32>, vector<64x8xf32> -> vector<64x8xf32>
    %c0_30 = arith.constant 0 : index
    %c0_31 = arith.constant 0 : index
    %38 = vector.load %arg12[%c0_30, %c0_31] : memref<1x8xf32, #tpu.memory_space<vmem>>, vector<1x8xf32>
    %39 = vector.broadcast %38 : vector<1x8xf32> to vector<64x8xf32>
    %40 = arith.addf %37, %39 : vector<64x8xf32>
    %41 = vector.shape_cast %40 : vector<64x8xf32> to vector<8x8x8xf32>
    %cst_32 = arith.constant dense<0xFF800000> : vector<8x8xf32>
    %42 = vector.multi_reduction <maximumf>, %41, %cst_32 [1] : vector<8x8x8xf32> to vector<8x8xf32>
    %c0_33 = arith.constant 0 : index
    %c0_34 = arith.constant 0 : index
    %43 = vector.load %arg13[%c0_33, %c0_34] : memref<8x16xf32, #tpu.memory_space<vmem>>, vector<8x16xf32>
    %cst_35 = arith.constant dense<0.000000e+00> : vector<64x16xf32>
    %44 = tpu.matmul %40, %43, %cst_35 {dimension_numbers = #tpu.dot_dimension_numbers<[1], [0], [0], [1], [0, 0, 1, 1], [], []>} : vector<64x8xf32>, vector<8x16xf32>, vector<64x16xf32> -> vector<64x16xf32>
    %45 = vector.shape_cast %44 : vector<64x16xf32> to vector<8x8x16xf32>
    %c0_36 = arith.constant 0 : index
    %c0_37 = arith.constant 0 : index
    %46 = vector.load %arg14[%c0_36, %c0_37] : memref<8x16xf32, #tpu.memory_space<vmem>>, vector<8x16xf32>
    %cst_38 = arith.constant dense<0.000000e+00> : vector<8x16xf32>
    %47 = tpu.matmul %42, %46, %cst_38 {dimension_numbers = #tpu.dot_dimension_numbers<[1], [0], [0], [1], [0, 0, 1, 1], [], []>} : vector<8x8xf32>, vector<8x16xf32>, vector<8x16xf32> -> vector<8x16xf32>
    %48 = vector.shape_cast %47 : vector<8x16xf32> to vector<8x1x16xf32>
    %49 = vector.broadcast %48 : vector<8x1x16xf32> to vector<8x8x16xf32>
    %50 = arith.addf %45, %49 : vector<8x8x16xf32>
    %c0_39 = arith.constant 0 : index
    %c0_40 = arith.constant 0 : index
    %51 = vector.load %arg15[%c0_39, %c0_40] : memref<1x16xf32, #tpu.memory_space<vmem>>, vector<1x16xf32>
    %52 = vector.shape_cast %51 : vector<1x16xf32> to vector<1x1x16xf32>
    %53 = vector.broadcast %52 : vector<1x1x16xf32> to vector<8x8x16xf32>
    %54 = arith.addf %50, %53 : vector<8x8x16xf32>
    %cst_41 = arith.constant dense<0xFF800000> : vector<8x16xf32>
    %55 = vector.multi_reduction <maximumf>, %54, %cst_41 [1] : vector<8x8x16xf32> to vector<8x16xf32>
    %c0_42 = arith.constant 0 : index
    %c0_43 = arith.constant 0 : index
    %56 = vector.load %arg16[%c0_42, %c0_43] : memref<8x16xf32, #tpu.memory_space<vmem>>, vector<8x16xf32>
    tpu.vector_store %arg16[%c0_42, %c0_43], %55 {strides = array<i32>} : memref<8x16xf32, #tpu.memory_space<vmem>>, vector<8x16xf32>,
    return
  }
  func.func @transform_0(%arg0: i32) -> (i32, i32, i32) {
    %c0_i32 = arith.constant 0 : i32
    %c0_i32_0 = arith.constant 0 : i32
    %c0_i32_1 = arith.constant 0 : i32
    return %arg0, %c0_i32, %c0_i32_0 : i32, i32, i32
  }
  func.func @transform_1(%arg0: i32) -> (i32, i32) {
    %c0_i32 = arith.constant 0 : i32
    %c0_i32_0 = arith.constant 0 : i32
    %c0_i32_1 = arith.constant 0 : i32
    return %c0_i32, %c0_i32_0 : i32, i32
  }
  func.func @transform_2(%arg0: i32) -> (i32, i32) {
    %c0_i32 = arith.constant 0 : i32
    %c0_i32_0 = arith.constant 0 : i32
    %c0_i32_1 = arith.constant 0 : i32
    return %c0_i32, %c0_i32_0 : i32, i32
  }
  func.func @transform_3(%arg0: i32) -> (i32, i32) {
    %c0_i32 = arith.constant 0 : i32
    %c0_i32_0 = arith.constant 0 : i32
    %c0_i32_1 = arith.constant 0 : i32
    return %c0_i32, %c0_i32_0 : i32, i32
  }
  func.func @transform_4(%arg0: i32) -> (i32, i32) {
    %c0_i32 = arith.constant 0 : i32
    %c0_i32_0 = arith.constant 0 : i32
    %c0_i32_1 = arith.constant 0 : i32
    return %c0_i32, %c0_i32_0 : i32, i32
  }
  func.func @transform_5(%arg0: i32) -> (i32, i32) {
    %c0_i32 = arith.constant 0 : i32
    %c0_i32_0 = arith.constant 0 : i32
    %c0_i32_1 = arith.constant 0 : i32
    return %c0_i32, %c0_i32_0 : i32, i32
  }
  func.func @transform_6(%arg0: i32) -> (i32, i32) {
    %c0_i32 = arith.constant 0 : i32
    %c0_i32_0 = arith.constant 0 : i32
    %c0_i32_1 = arith.constant 0 : i32
    return %c0_i32, %c0_i32_0 : i32, i32
  }
  func.func @transform_7(%arg0: i32) -> (i32, i32) {
    %c0_i32 = arith.constant 0 : i32
    %c0_i32_0 = arith.constant 0 : i32
    %c0_i32_1 = arith.constant 0 : i32
    return %c0_i32, %c0_i32_0 : i32, i32
  }
  func.func @transform_8(%arg0: i32) -> (i32, i32) {
    %c0_i32 = arith.constant 0 : i32
    %c0_i32_0 = arith.constant 0 : i32
    %c0_i32_1 = arith.constant 0 : i32
    return %c0_i32, %c0_i32_0 : i32, i32
  }
  func.func @transform_9(%arg0: i32) -> (i32, i32) {
    %c0_i32 = arith.constant 0 : i32
    %c0_i32_0 = arith.constant 0 : i32
    %c0_i32_1 = arith.constant 0 : i32
    return %c0_i32, %c0_i32_0 : i32, i32
  }
  func.func @transform_10(%arg0: i32) -> (i32, i32) {
    %c0_i32 = arith.constant 0 : i32
    %c0_i32_0 = arith.constant 0 : i32
    %c0_i32_1 = arith.constant 0 : i32
    return %c0_i32, %c0_i32_0 : i32, i32
  }
  func.func @transform_11(%arg0: i32) -> (i32, i32) {
    %c0_i32 = arith.constant 0 : i32
    %c0_i32_0 = arith.constant 0 : i32
    %c0_i32_1 = arith.constant 0 : i32
    return %c0_i32, %c0_i32_0 : i32, i32
  }
  func.func @transform_12(%arg0: i32) -> (i32, i32) {
    %c0_i32 = arith.constant 0 : i32
    %c0_i32_0 = arith.constant 0 : i32
    %c0_i32_1 = arith.constant 0 : i32
    return %c0_i32, %c0_i32_0 : i32, i32
  }
  func.func @transform_13(%arg0: i32) -> (i32, i32) {
    %c0_i32 = arith.constant 0 : i32
    %c0_i32_0 = arith.constant 0 : i32
    %c0_i32_1 = arith.constant 0 : i32
    return %c0_i32, %c0_i32_0 : i32, i32
  }
  func.func @transform_14(%arg0: i32) -> (i32, i32) {
    %c0_i32 = arith.constant 0 : i32
    %c0_i32_0 = arith.constant 0 : i32
    %c0_i32_1 = arith.constant 0 : i32
    return %c0_i32, %c0_i32_0 : i32, i32
  }
  func.func @transform_15(%arg0: i32) -> (i32, i32) {
    %c0_i32 = arith.constant 0 : i32
    %c0_i32_0 = arith.constant 0 : i32
    return %arg0, %c0_i32 : i32, i32
  }
}

module attributes {stable_mosaic.version = 11 : i64} {
  func.func @_decoder_kernel(%arg0: i32, %arg1: memref<4x16xf32, #tpu.memory_space<vmem>>, %arg2: memref<16x64xf32, #tpu.memory_space<vmem>>, %arg3: memref<1x64xf32, #tpu.memory_space<vmem>>, %arg4: memref<64x128xf32, #tpu.memory_space<vmem>>, %arg5: memref<1x128xf32, #tpu.memory_space<vmem>>, %arg6: memref<4x128xf32, #tpu.memory_space<vmem>>) attributes {dimension_semantics = [#tpu.dimension_semantics<parallel>], iteration_bounds = array<i64: 1>, scalar_prefetch = 0 : i64, scratch_operands = 0 : i64, tpu.core_type = #tpu.core_type<tc>, window_params = [{transform_indices = @transform_0, window_bounds = array<i64: 4, 16>}, {pipeline_mode = #tpu.pipeline_mode<synchronous>, transform_indices = @transform_1, window_bounds = array<i64: 16, 64>}, {pipeline_mode = #tpu.pipeline_mode<synchronous>, transform_indices = @transform_2, window_bounds = array<i64: 1, 64>}, {pipeline_mode = #tpu.pipeline_mode<synchronous>, transform_indices = @transform_3, window_bounds = array<i64: 64, 128>}, {pipeline_mode = #tpu.pipeline_mode<synchronous>, transform_indices = @transform_4, window_bounds = array<i64: 1, 128>}, {transform_indices = @transform_5, window_bounds = array<i64: 4, 128>}]} {
    %c0 = arith.constant 0 : index
    %c0_0 = arith.constant 0 : index
    %0 = vector.load %arg1[%c0, %c0_0] : memref<4x16xf32, #tpu.memory_space<vmem>>, vector<4x16xf32>
    %c0_1 = arith.constant 0 : index
    %c0_2 = arith.constant 0 : index
    %1 = vector.load %arg2[%c0_1, %c0_2] : memref<16x64xf32, #tpu.memory_space<vmem>>, vector<16x64xf32>
    %cst = arith.constant dense<0.000000e+00> : vector<4x64xf32>
    %2 = tpu.matmul %0, %1, %cst {dimension_numbers = #tpu.dot_dimension_numbers<[1], [0], [0], [1], [0, 0, 1, 1], [], []>} : vector<4x16xf32>, vector<16x64xf32>, vector<4x64xf32> -> vector<4x64xf32>
    %c0_3 = arith.constant 0 : index
    %c0_4 = arith.constant 0 : index
    %3 = vector.load %arg3[%c0_3, %c0_4] : memref<1x64xf32, #tpu.memory_space<vmem>>, vector<1x64xf32>
    %4 = vector.broadcast %3 : vector<1x64xf32> to vector<4x64xf32>
    %5 = arith.addf %2, %4 : vector<4x64xf32>
    %cst_5 = arith.constant 0.000000e+00 : f32
    %6 = vector.broadcast %cst_5 : f32 to vector<4x64xf32>
    %7 = arith.maximumf %5, %6 : vector<4x64xf32>
    %c0_6 = arith.constant 0 : index
    %c0_7 = arith.constant 0 : index
    %8 = vector.load %arg4[%c0_6, %c0_7] : memref<64x128xf32, #tpu.memory_space<vmem>>, vector<64x128xf32>
    %cst_8 = arith.constant dense<0.000000e+00> : vector<4x128xf32>
    %9 = tpu.matmul %7, %8, %cst_8 {dimension_numbers = #tpu.dot_dimension_numbers<[1], [0], [0], [1], [0, 0, 1, 1], [], []>} : vector<4x64xf32>, vector<64x128xf32>, vector<4x128xf32> -> vector<4x128xf32>
    %c0_9 = arith.constant 0 : index
    %c0_10 = arith.constant 0 : index
    %10 = vector.load %arg5[%c0_9, %c0_10] : memref<1x128xf32, #tpu.memory_space<vmem>>, vector<1x128xf32>
    %11 = vector.broadcast %10 : vector<1x128xf32> to vector<4x128xf32>
    %12 = arith.addf %9, %11 : vector<4x128xf32>
    %c0_11 = arith.constant 0 : index
    %c0_12 = arith.constant 0 : index
    %13 = vector.load %arg6[%c0_11, %c0_12] : memref<4x128xf32, #tpu.memory_space<vmem>>, vector<4x128xf32>
    tpu.vector_store %arg6[%c0_11, %c0_12], %12 {strides = array<i32>} : memref<4x128xf32, #tpu.memory_space<vmem>>, vector<4x128xf32>,
    return
  }
  func.func @transform_0(%arg0: i32) -> (i32, i32) {
    %c0_i32 = arith.constant 0 : i32
    %c0_i32_0 = arith.constant 0 : i32
    return %arg0, %c0_i32 : i32, i32
  }
  func.func @transform_1(%arg0: i32) -> (i32, i32) {
    %c0_i32 = arith.constant 0 : i32
    %c0_i32_0 = arith.constant 0 : i32
    %c0_i32_1 = arith.constant 0 : i32
    return %c0_i32, %c0_i32_0 : i32, i32
  }
  func.func @transform_2(%arg0: i32) -> (i32, i32) {
    %c0_i32 = arith.constant 0 : i32
    %c0_i32_0 = arith.constant 0 : i32
    %c0_i32_1 = arith.constant 0 : i32
    return %c0_i32, %c0_i32_0 : i32, i32
  }
  func.func @transform_3(%arg0: i32) -> (i32, i32) {
    %c0_i32 = arith.constant 0 : i32
    %c0_i32_0 = arith.constant 0 : i32
    %c0_i32_1 = arith.constant 0 : i32
    return %c0_i32, %c0_i32_0 : i32, i32
  }
  func.func @transform_4(%arg0: i32) -> (i32, i32) {
    %c0_i32 = arith.constant 0 : i32
    %c0_i32_0 = arith.constant 0 : i32
    %c0_i32_1 = arith.constant 0 : i32
    return %c0_i32, %c0_i32_0 : i32, i32
  }
  func.func @transform_5(%arg0: i32) -> (i32, i32) {
    %c0_i32 = arith.constant 0 : i32
    %c0_i32_0 = arith.constant 0 : i32
    return %arg0, %c0_i32 : i32, i32
  }
}

</mosaic_0001>

<bundles_post_ra>
// kernel: vectornet_prediction_forward.5
= control target key start
LH: loop header
LB: loop body
LE: loop exit
PB: predicated region body
PF: predicated region fallthrough
CT: control target
= control target key end

     0   :  { %v243_v0 = vmov 0.0   ;;  %vm244_vm0 = vmmov 0   ;;  %vm30_vm1 = vcmask 130048   ;;  %vm120_vm2 = vcmask 523264   ;;  %s319_s1 = inlined_call_operand.vmem [shape: f32[16,64], index: 1, kind: input, shape index: {}]   ;;  %s320_s0 = inlined_call_operand.vmem [shape: f32[4,16], index: 0, kind: input, shape index: {}]   ;;  %s321_s3 = inlined_call_operand.vmem [shape: f32[64,128], index: 3, kind: input, shape index: {}]   ;;  %s322_s2 = inlined_call_operand.vmem [shape: f32[1,64], index: 2, kind: input, shape index: {}]   ;;  %s323_s4 = inlined_call_operand.vmem [shape: f32[1,128], index: 4, kind: input, shape index: {}]   ;;  %s324_s5 = inlined_call_operand.vmem [shape: f32[4,128], index: 5, kind: output, shape index: {}]  }
   0x1   :  { %215 = vmatprep.subr.mxu0 %v243_v0  ;;  %v22_v1 = vld [vmem:[%s319_s1 + $0x8] sm:$0xff]  ;;  %v21_v2 = vld [vmem:[%s319_s1] sm:$0xff]  ;;  %219 = vmatprep.mubr.msk.f32.mxu0 %vm244_vm0, %v243_v0  ;;  %v112_v4 = vld [vmem:[%s321_s3 + $0x38] sm:$0xff] }
   0x2   :  { %216 = vmatpush3.msra.mxu0 %v22_v1  ;;  %v20_v3 = vld [vmem:[%s320_s0] sm:$0xf]  ;;  %222 = vmatprep.subr.mxu1 %v243_v0  ;;  %v111_v5 = vld [vmem:[%s321_s3 + $0x30] sm:$0xff]  ;;  %v110_v6 = vld [vmem:[%s321_s3 + $0x28] sm:$0xff] }
   0x3   :  { %217 = vmatprep.subr.mxu0 %v243_v0  ;;  %223 = vmatpush3.msra.mxu1 %v112_v4  ;;  %v109_v7 = vld [vmem:[%s321_s3 + $0x20] sm:$0xff]  ;;  %v108_v8 = vld [vmem:[%s321_s3 + $0x18] sm:$0xff]  ;;  %v107_v9 = vld [vmem:[%s321_s3 + $0x10] sm:$0xff] }
   0x4   :  { %218 = vmatpush3.msra.mxu0 %v21_v2  ;;  %224 = vmatprep.subr.mxu1 %v243_v0  ;;  %v106_v10 = vld [vmem:[%s321_s3 + $0x8] sm:$0xff]  ;;  %v105_v11 = vld [vmem:[%s321_s3] sm:$0xff] }
   0x5   :  { %220 = vmatmul.mubr.msk.f32.vlgmr.msra.gmra.mxu0 %vm30_vm1, %v20_v3  ;;  %225 = vmatpush3.msra.mxu1 %v111_v5  ;;  %v199_v12 = vld [vmem:[%s322_s2] ss:$0 sm:$0xff] }
   0x6   :  { %226 = vmatprep.subr.mxu1 %v243_v0  ;;  %238 = vmatprep.mubr.msk.f32.mxu1 %vm244_vm0, %v243_v0  ;;  %v201_v17 = vld [vmem:[%s323_s4] ss:$0 sm:$0xff] }
   0x7   :  { %227 = vmatpush3.msra.mxu1 %v110_v6 }
   0x8   :  { %228 = vmatprep.subr.mxu1 %v243_v0 }
   0x9   :  { %229 = vmatpush3.msra.mxu1 %v109_v7 }
   0xa   :  { %230 = vmatprep.subr.mxu1 %v243_v0 }
   0xb   :  { %231 = vmatpush3.msra.mxu1 %v108_v8 }
   0xc   :  { %232 = vmatprep.subr.mxu1 %v243_v0 }
   0xd   :  { %233 = vmatpush3.msra.mxu1 %v107_v9 }
   0xe   :  { %234 = vmatprep.subr.mxu1 %v243_v0 }
   0xf   :  { %235 = vmatpush3.msra.mxu1 %v106_v10 }
  0x10   :  { %236 = vmatprep.subr.mxu1 %v243_v0 }
  0x11   :  { %237 = vmatpush3.msra.mxu1 %v105_v11 }
  0xc5   :  { %v100_v13 = vpop.f32.mrf.mxu0 }
  0xc6   :  { %v101_v14 = vadd.f32 %v199_v12, %v100_v13 }
  0xc7   :  { %v221_v15 = vpop.f32.mrf.mxu0 }
  0xc8   :  { %v104_v16 = vmax.f32 %v101_v14, 0.0 }
  0xca   :  { %239 = vmatmul.mubr.msk.f32.vlgmr.msra.gmra.mxu1 %vm120_vm2, %v104_v16 }
 0x18a   :  { %v190_v18 = vpop.f32.mrf.mxu1 }
 0x18b   :  { %v191_v19 = vadd.f32 %v201_v17, %v190_v18 }
 0x18c   :  { %v240_v20 = vpop.f32.mrf.mxu1 }
 0x18d   :  { %194 = vst [vmem:[%s324_s5] sm:$0xf] %v191_v19 }

// kernel: vectornet_prediction_forward.3
= control target key start
LH: loop header
LB: loop body
LE: loop exit
PB: predicated region body
PF: predicated region fallthrough
CT: control target
= control target key end

     0   :  { %vm91_vm0 = vcmask 1043456   ;;  %vm66_vm1 = vcmask 31744   ;;  %vm223_vm2 = vcmask 523264   ;;  %v1764_v43 = vmov 0.0   ;;  %s2097_s1 = inlined_call_operand.vmem [shape: f32[4,64], index: 1, kind: input, shape index: {}]   ;;  %s2098_s0 = inlined_call_operand.vmem [shape: f32[8,8,4], index: 0, kind: input, shape index: {}]   ;;  %s2099_s3 = inlined_call_operand.vmem [shape: f32[64,4], index: 3, kind: input, shape index: {}]   ;;  %s2100_s2 = inlined_call_operand.vmem [shape: f32[1,64], index: 2, kind: input, shape index: {}]   ;;  %s2101_s5 = inlined_call_operand.vmem [shape: f32[4,8], index: 5, kind: input, shape index: {}]   ;;  %s2102_s6 = inlined_call_operand.vmem [shape: f32[4,8], index: 6, kind: input, shape index: {}]   ;;  %s2103_s4 = inlined_call_operand.vmem [shape: f32[1,4], index: 4, kind: input, shape index: {}]   ;;  %s2104_s8 = inlined_call_operand.vmem [shape: f32[8,64], index: 8, kind: input, shape index: {}]   ;;  %s2105_s10 = inlined_call_operand.vmem [shape: f32[64,8], index: 10, kind: input, shape index: {}]   ;;  %s2106_s7 = inlined_call_operand.vmem [shape: f32[1,8], index: 7, kind: input, shape index: {}]   ;;  %s2107_s9 = inlined_call_operand.vmem [shape: f32[1,64], index: 9, kind: input, shape index: {}]   ;;  %s2108_s12 = inlined_call_operand.vmem [shape: f32[8,16], index: 12, kind: input, shape index: {}]   ;;  %s2109_s13 = inlined_call_operand.vmem [shape: f32[8,16], index: 13, kind: input, shape index: {}]   ;;  %s2110_s11 = inlined_call_operand.vmem [shape: f32[1,8], index: 11, kind: input, shape index: {}]   ;;  %s2111_s14 = inlined_call_operand.vmem [shape: f32[1,16], index: 14, kind: input, shape index: {}]   ;;  %s2112_s15 = inlined_call_operand.vmem [shape: f32[8,16], index: 15, kind: output, shape index: {}]  }
   0x1   :  { %v58_v0 = vld [vmem:[%s2097_s1] sm:$0xf]  ;;  %v51_v2 = vld [vmem:[%s2098_s0 + $0x8] sm:$0xff]  ;;  %v52_v3 = vld [vmem:[%s2098_s0 + $0x10] sm:$0xff]  ;;  %vm1765_vm3 = vmmov 0   ;;  %vm551_vm4 = vcmask 1041409  }
   0x2   :  { %v50_v1 = vld [vmem:[%s2098_s0] sm:$0xff]  ;;  %1639 = vmatprep.subr.msk.mxu0 %vm91_vm0, %v58_v0  ;;  %v215_v4 = vld [vmem:[%s2099_s3 + $0x38] sm:$0xff]  ;;  %v214_v5 = vld [vmem:[%s2099_s3 + $0x30] sm:$0xff]  ;;  %vm553_vm5 = vcmask 1042434   ;;  %vm555_vm6 = vcmask 1043459   ;;  %vm557_vm7 = vcmask 1044484  }
   0x3   :  { %1641 = vmatprep.mubr.msk.f32.mxu0 %vm66_vm1, %v50_v1  ;;  %1640 = vmatpush3.msk.msra.mxu0 %vm91_vm0, %v58_v0  ;;  %v53_v6 = vld [vmem:[%s2098_s0 + $0x18] sm:$0xff]  ;;  %v54_v7 = vld [vmem:[%s2098_s0 + $0x20] sm:$0xff]  ;;  %v213_v8 = vld [vmem:[%s2099_s3 + $0x28] sm:$0xff]  ;;  %vm559_vm8 = vcmask 1045509   ;;  %vm561_vm9 = vcmask 1046534   ;;  %vm563_vm10 = vcmask 1047559  }
   0x4   :  { %1642 = vmatmul.mubr.msk.f32.vlgmr.msra.gmra.mxu0 %vm66_vm1, %v51_v2  ;;  %1653 = vmatprep.subr.mxu1 %v215_v4  ;;  %v212_v9 = vld [vmem:[%s2099_s3 + $0x20] sm:$0xff]  ;;  %v55_v10 = vld [vmem:[%s2098_s0 + $0x28] sm:$0xff]  ;;  %v56_v11 = vld [vmem:[%s2098_s0 + $0x30] sm:$0xff]  ;;  %vm761_vm11 = vcmask 64512   ;;  %vm1430_vm12 = vcmask 130048  }
   0x5   :  { %1644 = vmatprep.mubr.msk.f32.mxu0 %vm66_vm1, %v52_v3  ;;  %1654 = vmatpush3.msra.mxu1 %v215_v4  ;;  %v57_v12 = vld [vmem:[%s2098_s0 + $0x38] sm:$0xff]  ;;  %v210_v14 = vld [vmem:[%s2099_s3 + $0x10] sm:$0xff]  ;;  %v209_v15 = vld [vmem:[%s2099_s3 + $0x8] sm:$0xff] }
   0x6   :  { %1655 = vmatprep.subr.mxu1 %v214_v5  ;;  %v211_v13 = vld [vmem:[%s2099_s3 + $0x18] sm:$0xff]  ;;  %v208_v16 = vld [vmem:[%s2099_s3] sm:$0xff] }
   0x7   :  { %1656 = vmatpush3.msra.mxu1 %v214_v5  ;;  %v1508_v17 = vld [vmem:[%s2100_s2] ss:$0 sm:$0xff] }
   0x8   :  { %1645 = vmatmul.mubr.msk.f32.gmra.mxu0 %vm66_vm1, %v53_v6  ;;  %1657 = vmatprep.subr.mxu1 %v213_v8  ;;  %v409_v42 = vld [vmem:[%s2101_s5] sm:$0xf] }
   0x9   :  { %1647 = vmatprep.mubr.msk.f32.mxu0 %vm66_vm1, %v54_v7  ;;  %1658 = vmatpush3.msra.mxu1 %v213_v8  ;;  %v542_v44 = vld [vmem:[%s2102_s6] sm:$0xf] }
   0xa   :  { %1659 = vmatprep.subr.mxu1 %v212_v9  ;;  %1681 = vmatprep.subr.msk.mxu0 %vm91_vm0, %v409_v42  ;;  %v1518_v45 = vld [vmem:[%s2103_s4] ss:$0 sm:$0xff] }
   0xb   :  { %1660 = vmatpush3.msra.mxu1 %v212_v9  ;;  %1682 = vmatpush3.msk.msra.mxu0 %vm91_vm0, %v409_v42 }
   0xc   :  { %1648 = vmatmul.mubr.msk.f32.gmra.mxu0 %vm66_vm1, %v55_v10  ;;  %1661 = vmatprep.subr.mxu1 %v211_v13 }
   0xd   :  { %1650 = vmatprep.mubr.msk.f32.mxu0 %vm66_vm1, %v56_v11  ;;  %1662 = vmatpush3.msra.mxu1 %v211_v13 }
   0xe   :  { %1663 = vmatprep.subr.mxu1 %v210_v14 }
   0xf   :  { %1664 = vmatpush3.msra.mxu1 %v210_v14 }
  0x10   :  { %1651 = vmatmul.mubr.msk.f32.gmra.mxu0 %vm66_vm1, %v57_v12  ;;  %1665 = vmatprep.subr.mxu1 %v209_v15 }
  0x11   :  { %1666 = vmatpush3.msra.mxu1 %v209_v15 }
  0x12   :  { %1667 = vmatprep.subr.mxu1 %v208_v16 }
  0x13   :  { %1668 = vmatpush3.msra.mxu1 %v208_v16 }
  0x14   :  { %1695 = vmatprep.subr.mxu1 %v1764_v43 }
  0xc4   :  { %v1643_v18 = vpop.f32.mrf.mxu0 }
  0xc5   :  { %v167_v19 = vadd.f32 %v1643_v18, %v1508_v17 }
  0xc6   :  { %v161_v20 = vpop.f32.mrf.mxu0 }
  0xc7   :  { %v162_v21 = vadd.f32 %v1508_v17, %v161_v20  ;;  %v201_v24 = vmax.f32 %v167_v19, 0.0 }
  0xc8   :  { %v1646_v22 = vpop.f32.mrf.mxu0 }
  0xc9   :  { %v200_v23 = vmax.f32 %v162_v21, 0.0  ;;  %v177_v25 = vadd.f32 %v1646_v22, %v1508_v17 }
  0xca   :  { %v171_v26 = vpop.f32.mrf.mxu0 }
  0xcb   :  { %v172_v27 = vadd.f32 %v1508_v17, %v171_v26  ;;  %1669 = vmatprep.mubr.msk.f32.mxu1 %vm223_vm2, %v200_v23  ;;  %v203_v30 = vmax.f32 %v177_v25, 0.0 }
  0xcc   :  { %v1649_v28 = vpop.f32.mrf.mxu0  ;;  %1670 = vmatmul.mubr.msk.f32.vlgmr.msra.gmra.mxu1 %vm223_vm2, %v201_v24 }
  0xcd   :  { %v202_v29 = vmax.f32 %v172_v27, 0.0  ;;  %v187_v31 = vadd.f32 %v1649_v28, %v1508_v17  ;;  %1696 = vmatpush3.msk.msra.mxu1 %vm91_vm0, %v542_v44 }
  0xce   :  { %v181_v32 = vpop.f32.mrf.mxu0 }
  0xcf   :  { %v182_v33 = vadd.f32 %v1508_v17, %v181_v32  ;;  %1672 = vmatprep.mubr.msk.f32.mxu1 %vm223_vm2, %v202_v29  ;;  %v205_v36 = vmax.f32 %v187_v31, 0.0 }
  0xd0   :  { %v1652_v34 = vpop.f32.mrf.mxu0  ;;  %1673 = vmatmul.mubr.msk.f32.gmra.mxu1 %vm223_vm2, %v203_v30 }
  0xd1   :  { %v204_v35 = vmax.f32 %v182_v33, 0.0  ;;  %v197_v37 = vadd.f32 %v1652_v34, %v1508_v17 }
  0xd2   :  { %v191_v38 = vpop.f32.mrf.mxu0 }
  0xd3   :  { %v192_v39 = vadd.f32 %v1508_v17, %v191_v38  ;;  %1675 = vmatprep.mubr.msk.f32.mxu1 %vm223_vm2, %v204_v35  ;;  %v207_v41 = vmax.f32 %v197_v37, 0.0 }
  0xd4   :  { %1676 = vmatmul.mubr.msk.f32.gmra.mxu1 %vm223_vm2, %v205_v36 }
  0xd5   :  { %v206_v40 = vmax.f32 %v192_v39, 0.0 }
  0xd7   :  { %1678 = vmatprep.mubr.msk.f32.mxu1 %vm223_vm2, %v206_v40 }
  0xd8   :  { %1679 = vmatmul.mubr.msk.f32.gmra.mxu1 %vm223_vm2, %v207_v41 }
  0xd9   :  { %1697 = vmatprep.mubr.msk.f32.mxu1 %vm1765_vm3, %v1764_v43 }
 0x18c   :  { %v1671_v46 = vpop.f32.mrf.mxu1 }
 0x18d   :  { %v320_v47 = vadd.f32 %v1671_v46, %v1518_v45 }
 0x18e   :  { %v314_v48 = vpop.f32.mrf.mxu1 }
 0x18f   :  { %v360_v49 = vsel %vm66_vm1, %v320_v47, -inf  ;;  %v315_v50 = vadd.f32 %v1518_v45, %v314_v48 }
 0x190   :  { %v361_v51 = vrot.slane %v360_v49, 4  ;;  %v1674_v52 = vpop.f32.mrf.mxu1 }
 0x191   :  { %v353_v53 = vsel %vm66_vm1, %v315_v50, -inf  ;;  %v330_v54 = vadd.f32 %v1674_v52, %v1518_v45  ;;  %1683 = vmatprep.mubr.msk.f32.mxu0 %vm66_vm1, %v315_v50 }
 0x192   :  { %v362_v55 = vmax.f32 %v360_v49, %v361_v51  ;;  %v354_v56 = vrot.slane %v353_v53, 4  ;;  %v324_v57 = vpop.f32.mrf.mxu1  ;;  %1684 = vmatmul.mubr.msk.f32.vlgmr.msra.gmra.mxu0 %vm66_vm1, %v320_v47 }
 0x193   :  { %v374_v58 = vsel %vm66_vm1, %v330_v54, -inf  ;;  %v325_v59 = vadd.f32 %v1518_v45, %v324_v57 }
 0x194   :  { %v363_v60 = vrot.slane %v362_v55, 2  ;;  %v355_v61 = vmax.f32 %v353_v53, %v354_v56  ;;  %v375_v62 = vrot.slane %v374_v58, 4  ;;  %v1677_v63 = vpop.f32.mrf.mxu1 }
 0x195   :  { %v367_v0 = vsel %vm66_vm1, %v325_v59, -inf  ;;  %v340_v1 = vadd.f32 %v1677_v63, %v1518_v45  ;;  %1686 = vmatprep.mubr.msk.f32.mxu0 %vm66_vm1, %v325_v59  ;;  %v906_v63 = vld [vmem:[%s2105_s10 + $0x38] sm:$0xff] }
 0x196   :  { %v364_v2 = vmax.f32 %v362_v55, %v363_v60  ;;  %v356_v3 = vrot.slane %v355_v61, 2  ;;  %v376_v4 = vmax.f32 %v374_v58, %v375_v62  ;;  %v368_v5 = vrot.slane %v367_v0, 4  ;;  %v334_v6 = vpop.f32.mrf.mxu1  ;;  %1687 = vmatmul.mubr.msk.f32.gmra.mxu0 %vm66_vm1, %v330_v54  ;;  %v753_v62 = vld [vmem:[%s2104_s8] sm:$0xff]  ;;  %1714 = vmatprep.subr.mxu1 %v906_v63 }
 0x197   :  { %v388_v7 = vsel %vm66_vm1, %v340_v1, -inf  ;;  %v335_v8 = vadd.f32 %v1518_v45, %v334_v6  ;;  %1700 = vmatprep.subr.mxu0 %v753_v62  ;;  %v645_v6 = vlaneseq }
 0x198   :  { %v357_v9 = vmax.f32 %v355_v61, %v356_v3  ;;  %v377_v10 = vrot.slane %v376_v4, 2  ;;  %v369_v11 = vmax.f32 %v367_v0, %v368_v5  ;;  %v1680_v12 = vpop.f32.mrf.mxu1  ;;  %v389_v13 = vrot.slane %v388_v7, 4  ;;  %1701 = vmatpush3.msra.mxu0 %v753_v62  ;;  %v905_v0 = vld [vmem:[%s2105_s10 + $0x30] sm:$0xff]  ;;  %v899_v62 = vld [vmem:[%s2105_s10] sm:$0xff] }
 0x199   :  { %v381_v14 = vsel %vm66_vm1, %v335_v8, -inf  ;;  %v350_v15 = vadd.f32 %v1680_v12, %v1518_v45  ;;  %1689 = vmatprep.mubr.msk.f32.mxu0 %vm66_vm1, %v335_v8  ;;  %v365_v16 = vrot.slane %v364_v2, 1 }
 0x19a   :  { %v358_v17 = vrot.slane %v357_v9, 1  ;;  %v370_v18 = vrot.slane %v369_v11, 2  ;;  %v344_v19 = vpop.f32.mrf.mxu1  ;;  %1690 = vmatmul.mubr.msk.f32.gmra.mxu0 %vm66_vm1, %v340_v1  ;;  %v390_v20 = vmax.f32 %v388_v7, %v389_v13  ;;  %v382_v21 = vrot.slane %v381_v14, 4  ;;  %v904_v1 = vld [vmem:[%s2105_s10 + $0x28] sm:$0xff] }
 0x19b   :  { %v402_v22 = vsel %vm66_vm1, %v350_v15, -inf  ;;  %v345_v23 = vadd.f32 %v1518_v45, %v344_v19  ;;  %v378_v24 = vmax.f32 %v376_v4, %v377_v10  ;;  %v366_v33 = vmax.f32 %v364_v2, %v365_v16  ;;  %v903_v2 = vld [vmem:[%s2105_s10 + $0x20] sm:$0xff] }
 0x19c   :  { %v371_v25 = vmax.f32 %v369_v11, %v370_v18  ;;  %v403_v26 = vrot.slane %v402_v22, 4  ;;  %v391_v27 = vrot.slane %v390_v20, 2  ;;  %v383_v28 = vmax.f32 %v381_v14, %v382_v21 }
 0x19d   :  { %v395_v29 = vsel %vm66_vm1, %v345_v23, -inf  ;;  %1692 = vmatprep.mubr.msk.f32.mxu0 %vm66_vm1, %v345_v23  ;;  %v359_v30 = vmax.f32 %v357_v9, %v358_v17  ;;  %v379_v36 = vrot.slane %v378_v24, 1  ;;  %v1766_v4 = vmov 1966171168  }
 0x19e   :  { %v372_v31 = vrot.slane %v371_v25, 1  ;;  %v404_v32 = vmax.f32 %v402_v22, %v403_v26  ;;  %1693 = vmatmul.mubr.msk.f32.gmra.mxu0 %vm66_vm1, %v350_v15  ;;  %v384_v34 = vrot.slane %v383_v28, 2  ;;  %v396_v35 = vrot.slane %v395_v29, 4 }
 0x19f   :  { %v392_v38 = vmax.f32 %v390_v20, %v391_v27  ;;  %v552_v42 = vsel %vm551_vm4, %v366_v33, %v359_v30  ;;  %v380_v48 = vmax.f32 %v378_v24, %v379_v36  ;;  %v643_v5 = vunpack.c.l.s4 %v1766_v4  ;;  %v1538_v30 = vld [vmem:[%s2106_s7] ss:$0 sm:$0xff] }
 0x1a0   :  { %v373_v37 = vmax.f32 %v371_v25, %v372_v31  ;;  %v405_v39 = vrot.slane %v404_v32, 2  ;;  %v385_v40 = vmax.f32 %v383_v28, %v384_v34  ;;  %v397_v41 = vmax.f32 %v395_v29, %v396_v35 }
 0x1a1   :  { %v393_v49 = vrot.slane %v392_v38, 1  ;;  %v644_v8 = vunpack.c.0.s8 %v643_v5  ;;  %v646_v9 = vshrl.u32 %v645_v6, 7 }
 0x1a2   :  { %v406_v44 = vmax.f32 %v404_v32, %v405_v39  ;;  %v554_v45 = vsel %vm553_vm5, %v373_v37, %v552_v42  ;;  %v386_v46 = vrot.slane %v385_v40, 1  ;;  %v398_v47 = vrot.slane %v397_v41, 2 }
 0x1a3   :  { %v556_v52 = vsel %vm555_vm6, %v380_v48, %v554_v45  ;;  %v394_v56 = vmax.f32 %v392_v38, %v393_v49  ;;  %v1973_v11 = vsub.s32 %v644_v8, %v646_v9  ;;  %v1976_v16 = vsub.s32 0, %v646_v9 }
 0x1a4   :  { %v387_v50 = vmax.f32 %v385_v40, %v386_v46  ;;  %v399_v51 = vmax.f32 %v397_v41, %v398_v47  ;;  %v407_v53 = vrot.slane %v406_v44, 1 }
 0x1a6   :  { %v558_v54 = vsel %vm557_vm7, %v387_v50, %v556_v52  ;;  %v400_v55 = vrot.slane %v399_v51, 1  ;;  %v408_v58 = vmax.f32 %v406_v44, %v407_v53 }
 0x1a7   :  { %v560_v59 = vsel %vm559_vm8, %v394_v56, %v558_v54 }
 0x1a8   :  { %v401_v57 = vmax.f32 %v399_v51, %v400_v55 }
 0x1aa   :  { %v562_v60 = vsel %vm561_vm9, %v401_v57, %v560_v59  ;;  %v902_v59 = vld [vmem:[%s2105_s10 + $0x18] sm:$0xff] }
 0x1ab   :  { %v564_v61 = vsel %vm563_vm10, %v408_v58, %v562_v60  ;;  %v901_v60 = vld [vmem:[%s2105_s10 + $0x10] sm:$0xff] }
 0x1ac   :  { %1698 = vmatmul.mubr.msk.f32.vlgmr.msra.gmra.mxu1 %vm66_vm1, %v564_v61  ;;  %v900_v61 = vld [vmem:[%s2105_s10 + $0x8] sm:$0xff] }
 0x1ad   :  { %1715 = vmatpush3.msra.mxu1 %v906_v63  ;;  %v1539_v63 = vld [vmem:[%s2107_s9] ss:$0 sm:$0xff] }
 0x1ae   :  { %1716 = vmatprep.subr.mxu1 %v905_v0 }
 0x1af   :  { %1717 = vmatpush3.msra.mxu1 %v905_v0 }
 0x1b0   :  { %1718 = vmatprep.subr.mxu1 %v904_v1 }
 0x1b1   :  { %1719 = vmatpush3.msra.mxu1 %v904_v1 }
 0x1b2   :  { %1720 = vmatprep.subr.mxu1 %v903_v2 }
 0x1b3   :  { %1721 = vmatpush3.msra.mxu1 %v903_v2 }
 0x1b4   :  { %1722 = vmatprep.subr.mxu1 %v902_v59 }
 0x1b5   :  { %1723 = vmatpush3.msra.mxu1 %v902_v59 }
 0x1b6   :  { %1724 = vmatprep.subr.mxu1 %v901_v60 }
 0x1b7   :  { %1725 = vmatpush3.msra.mxu1 %v901_v60 }
 0x1b8   :  { %1726 = vmatprep.subr.mxu1 %v900_v61 }
 0x1b9   :  { %1727 = vmatpush3.msra.mxu1 %v900_v61 }
 0x1ba   :  { %1728 = vmatprep.subr.mxu1 %v899_v62 }
 0x1bb   :  { %1729 = vmatpush3.msra.mxu1 %v899_v62 }
 0x1bc   :  { %1756 = vmatprep.subr.mxu1 %v1764_v43 }
 0x252   :  { %v1685_v3 = vpop.f32.mrf.mxu0 }
 0x254   :  { %v503_v7 = vpop.f32.mrf.mxu0 }
 0x256   :  { %v1688_v10 = vpop.f32.mrf.mxu0 }
 0x258   :  { %v513_v12 = vpop.f32.mrf.mxu0 }
 0x25a   :  { %v1691_v21 = vpop.f32.mrf.mxu0 }
 0x25c   :  { %v523_v31 = vpop.f32.mrf.mxu0 }
 0x25e   :  { %v1694_v41 = vpop.f32.mrf.mxu0 }
 0x260   :  { %v533_v49 = vpop.f32.mrf.mxu0 }
 0x26c   :  { %v636_v13 = vpop.f32.mrf.mxu1 }
 0x26d   :  { %v641_v14 = vcombine.high %v636_v13, %v636_v13  ;;  %v648_v15 = vrot.slane %v636_v13, %v1973_v11 }
 0x26e   :  { %v1699_v17 = vpop.f32.mrf.mxu1 }
 0x26f   :  { %v655_v18 = vrot.slane %v641_v14, %v1973_v11  ;;  %v656_v19 = vcombine.high %v648_v15, %v648_v15  ;;  %v664_v20 = vrot.slane %v648_v15, %v1973_v11 }
 0x271   :  { %v657_v22 = vcombine.high %v655_v18, %v655_v18  ;;  %v671_v23 = vrot.slane %v655_v18, %v1973_v11  ;;  %v678_v24 = vrot.slane %v656_v19, %v1973_v11  ;;  %v686_v25 = vcombine.high %v664_v20, %v664_v20 }
 0x272   :  { %v693_v26 = vrot.slane %v664_v20, %v1976_v16 }
 0x273   :  { %v685_v27 = vrot.slane %v657_v22, %v1973_v11  ;;  %v688_v28 = vcombine.high %v678_v24, %v678_v24  ;;  %v697_v29 = vrot.slane %v678_v24, %v1976_v16  ;;  %v701_v32 = vrot.slane %v686_v25, %v1976_v16 }
 0x274   :  { %v730_v33 = vadd.f32 %v693_v26, %v503_v7  ;;  %v687_v34 = vcombine.high %v671_v23, %v671_v23  ;;  %v709_v36 = vrot.slane %v671_v23, %v1976_v16  ;;  %v1099_v26 = vld [vmem:[%s2108_s12] sm:$0xff] }
 0x275   :  { %v705_v35 = vrot.slane %v688_v28, %v1976_v16  ;;  %v731_v37 = vadd.f32 %v1685_v3, %v697_v29  ;;  %v732_v39 = vadd.f32 %v701_v32, %v513_v12  ;;  %v689_v40 = vcombine.high %v685_v27, %v685_v27  ;;  %1742 = vmatprep.subr.mxu0 %v1099_v26  ;;  %v1548_v28 = vld [vmem:[%s2110_s11] ss:$0 sm:$0xff] }
 0x276   :  { %v745_v38 = vadd.f32 %v1538_v30, %v730_v33  ;;  %v713_v42 = vrot.slane %v685_v27, %v1976_v16  ;;  %v717_v47 = vrot.slane %v687_v34, %v1976_v16  ;;  %v734_v48 = vadd.f32 %v709_v36, %v523_v31  ;;  %v1229_v27 = vld [vmem:[%s2109_s13] sm:$0xff] }
 0x277   :  { %v746_v44 = vadd.f32 %v1538_v30, %v731_v37  ;;  %v747_v45 = vadd.f32 %v1538_v30, %v732_v39  ;;  %v733_v46 = vadd.f32 %v1688_v10, %v705_v35  ;;  %v721_v52 = vrot.slane %v689_v40, %v1976_v16 }
 0x278   :  { %1702 = vmatprep.mubr.msk.f32.mxu0 %vm761_vm11, %v745_v38  ;;  %v735_v51 = vadd.f32 %v1691_v21, %v713_v42  ;;  %v749_v53 = vadd.f32 %v1538_v30, %v734_v48  ;;  %v736_v54 = vadd.f32 %v717_v47, %v533_v49 }
 0x279   :  { %1703 = vmatmul.mubr.msk.f32.vlgmr.msra.gmra.mxu0 %vm761_vm11, %v746_v44  ;;  %v748_v50 = vadd.f32 %v1538_v30, %v733_v46  ;;  %v737_v56 = vadd.f32 %v1694_v41, %v721_v52 }
 0x27a   :  { %1705 = vmatprep.mubr.msk.f32.mxu0 %vm761_vm11, %v747_v45  ;;  %v750_v55 = vadd.f32 %v1538_v30, %v735_v51  ;;  %v751_v57 = vadd.f32 %v1538_v30, %v736_v54  ;;  %1743 = vmatpush3.msra.mxu0 %v1099_v26 }
 0x27b   :  { %v752_v58 = vadd.f32 %v1538_v30, %v737_v56 }
 0x27d   :  { %1706 = vmatmul.mubr.msk.f32.gmra.mxu0 %vm761_vm11, %v748_v50 }
 0x27e   :  { %1708 = vmatprep.mubr.msk.f32.mxu0 %vm761_vm11, %v749_v53 }
 0x281   :  { %1709 = vmatmul.mubr.msk.f32.gmra.mxu0 %vm761_vm11, %v750_v55 }
 0x282   :  { %1711 = vmatprep.mubr.msk.f32.mxu0 %vm761_vm11, %v751_v57 }
 0x285   :  { %1712 = vmatmul.mubr.msk.f32.gmra.mxu0 %vm761_vm11, %v752_v58 }
 0x339   :  { %v1704_v0 = vpop.f32.mrf.mxu0 }
 0x33a   :  { %v858_v1 = vadd.f32 %v1704_v0, %v1539_v63 }
 0x33b   :  { %v852_v2 = vpop.f32.mrf.mxu0 }
 0x33c   :  { %v853_v3 = vadd.f32 %v1539_v63, %v852_v2  ;;  %v892_v6 = vmax.f32 %v858_v1, 0.0 }
 0x33d   :  { %v1707_v4 = vpop.f32.mrf.mxu0 }
 0x33e   :  { %v891_v5 = vmax.f32 %v853_v3, 0.0  ;;  %v868_v7 = vadd.f32 %v1707_v4, %v1539_v63 }
 0x33f   :  { %v862_v8 = vpop.f32.mrf.mxu0 }
 0x340   :  { %v863_v9 = vadd.f32 %v1539_v63, %v862_v8  ;;  %1730 = vmatprep.mubr.msk.f32.mxu1 %vm223_vm2, %v891_v5  ;;  %v894_v13 = vmax.f32 %v868_v7, 0.0 }
 0x341   :  { %v1710_v10 = vpop.f32.mrf.mxu0  ;;  %1731 = vmatmul.mubr.msk.f32.vlgmr.msra.gmra.mxu1 %vm223_vm2, %v892_v6 }
 0x342   :  { %v893_v12 = vmax.f32 %v863_v9, 0.0  ;;  %v878_v14 = vadd.f32 %v1710_v10, %v1539_v63  ;;  %1757 = vmatpush3.msra.mxu1 %v1229_v27 }
 0x343   :  { %v872_v15 = vpop.f32.mrf.mxu0 }
 0x344   :  { %v873_v17 = vadd.f32 %v1539_v63, %v872_v15  ;;  %1733 = vmatprep.mubr.msk.f32.mxu1 %vm223_vm2, %v893_v12  ;;  %v896_v20 = vmax.f32 %v878_v14, 0.0 }
 0x345   :  { %v1713_v18 = vpop.f32.mrf.mxu0  ;;  %1734 = vmatmul.mubr.msk.f32.gmra.mxu1 %vm223_vm2, %v894_v13 }
 0x346   :  { %v895_v19 = vmax.f32 %v873_v17, 0.0  ;;  %v888_v21 = vadd.f32 %v1713_v18, %v1539_v63 }
 0x347   :  { %v882_v22 = vpop.f32.mrf.mxu0 }
 0x348   :  { %v883_v23 = vadd.f32 %v1539_v63, %v882_v22  ;;  %1736 = vmatprep.mubr.msk.f32.mxu1 %vm223_vm2, %v895_v19  ;;  %v898_v25 = vmax.f32 %v888_v21, 0.0 }
 0x349   :  { %1737 = vmatmul.mubr.msk.f32.gmra.mxu1 %vm223_vm2, %v896_v20 }
 0x34a   :  { %v897_v24 = vmax.f32 %v883_v23, 0.0 }
 0x34c   :  { %1739 = vmatprep.mubr.msk.f32.mxu1 %vm223_vm2, %v897_v24 }
 0x34d   :  { %1740 = vmatmul.mubr.msk.f32.gmra.mxu1 %vm223_vm2, %v898_v25 }
 0x34e   :  { %1758 = vmatprep.mubr.msk.f32.mxu1 %vm1765_vm3, %v1764_v43 }
 0x401   :  { %v1732_v29 = vpop.f32.mrf.mxu1 }
 0x402   :  { %v1010_v30 = vadd.f32 %v1732_v29, %v1548_v28 }
 0x403   :  { %v1004_v31 = vpop.f32.mrf.mxu1 }
 0x404   :  { %v1050_v43 = vsel %vm761_vm11, %v1010_v30, -inf  ;;  %v1005_v32 = vadd.f32 %v1548_v28, %v1004_v31 }
 0x405   :  { %v1051_v33 = vrot.slane %v1050_v43, 4  ;;  %v1735_v34 = vpop.f32.mrf.mxu1 }
 0x406   :  { %v1043_v35 = vsel %vm761_vm11, %v1005_v32, -inf  ;;  %v1020_v36 = vadd.f32 %v1735_v34, %v1548_v28  ;;  %1744 = vmatprep.mubr.msk.f32.mxu0 %vm761_vm11, %v1005_v32 }
 0x407   :  { %v1052_v37 = vmax.f32 %v1050_v43, %v1051_v33  ;;  %v1044_v38 = vrot.slane %v1043_v35, 4  ;;  %v1014_v39 = vpop.f32.mrf.mxu1  ;;  %1745 = vmatmul.mubr.msk.f32.vlgmr.msra.gmra.mxu0 %vm761_vm11, %v1010_v30 }
 0x408   :  { %v1064_v40 = vsel %vm761_vm11, %v1020_v36, -inf  ;;  %v1015_v41 = vadd.f32 %v1548_v28, %v1014_v39 }
 0x409   :  { %v1053_v42 = vrot.slane %v1052_v37, 2  ;;  %v1045_v44 = vmax.f32 %v1043_v35, %v1044_v38  ;;  %v1065_v45 = vrot.slane %v1064_v40, 4  ;;  %v1738_v46 = vpop.f32.mrf.mxu1 }
 0x40a   :  { %v1057_v47 = vsel %vm761_vm11, %v1015_v41, -inf  ;;  %v1030_v48 = vadd.f32 %v1738_v46, %v1548_v28  ;;  %1747 = vmatprep.mubr.msk.f32.mxu0 %vm761_vm11, %v1015_v41 }
 0x40b   :  { %v1054_v49 = vmax.f32 %v1052_v37, %v1053_v42  ;;  %v1046_v50 = vrot.slane %v1045_v44, 2  ;;  %v1066_v51 = vmax.f32 %v1064_v40, %v1065_v45  ;;  %v1058_v52 = vrot.slane %v1057_v47, 4  ;;  %v1024_v53 = vpop.f32.mrf.mxu1  ;;  %1748 = vmatmul.mubr.msk.f32.gmra.mxu0 %vm761_vm11, %v1020_v36 }
 0x40c   :  { %v1078_v54 = vsel %vm761_vm11, %v1030_v48, -inf  ;;  %v1025_v55 = vadd.f32 %v1548_v28, %v1024_v53 }
 0x40d   :  { %v1047_v56 = vmax.f32 %v1045_v44, %v1046_v50  ;;  %v1067_v57 = vrot.slane %v1066_v51, 2  ;;  %v1059_v58 = vmax.f32 %v1057_v47, %v1058_v52  ;;  %v1741_v59 = vpop.f32.mrf.mxu1  ;;  %v1079_v60 = vrot.slane %v1078_v54, 4 }
 0x40e   :  { %v1071_v61 = vsel %vm761_vm11, %v1025_v55, -inf  ;;  %v1040_v62 = vadd.f32 %v1741_v59, %v1548_v28  ;;  %1750 = vmatprep.mubr.msk.f32.mxu0 %vm761_vm11, %v1025_v55  ;;  %v1055_v63 = vrot.slane %v1054_v49, 1 }
 0x40f   :  { %v1048_v0 = vrot.slane %v1047_v56, 1  ;;  %v1060_v1 = vrot.slane %v1059_v58, 2  ;;  %v1034_v2 = vpop.f32.mrf.mxu1  ;;  %1751 = vmatmul.mubr.msk.f32.gmra.mxu0 %vm761_vm11, %v1030_v48  ;;  %v1080_v3 = vmax.f32 %v1078_v54, %v1079_v60  ;;  %v1072_v4 = vrot.slane %v1071_v61, 4 }
 0x410   :  { %v1092_v5 = vsel %vm761_vm11, %v1040_v62, -inf  ;;  %v1035_v6 = vadd.f32 %v1548_v28, %v1034_v2  ;;  %v1068_v7 = vmax.f32 %v1066_v51, %v1067_v57  ;;  %v1056_v18 = vmax.f32 %v1054_v49, %v1055_v63 }
 0x411   :  { %v1061_v8 = vmax.f32 %v1059_v58, %v1060_v1  ;;  %v1093_v9 = vrot.slane %v1092_v5, 4  ;;  %v1081_v10 = vrot.slane %v1080_v3, 2  ;;  %v1073_v12 = vmax.f32 %v1071_v61, %v1072_v4 }
 0x412   :  { %v1085_v13 = vsel %vm761_vm11, %v1035_v6, -inf  ;;  %1753 = vmatprep.mubr.msk.f32.mxu0 %vm761_vm11, %v1035_v6  ;;  %v1049_v14 = vmax.f32 %v1047_v56, %v1048_v0  ;;  %v1069_v21 = vrot.slane %v1068_v7, 1 }
 0x413   :  { %v1062_v15 = vrot.slane %v1061_v8, 1  ;;  %v1094_v17 = vmax.f32 %v1092_v5, %v1093_v9  ;;  %1754 = vmatmul.mubr.msk.f32.gmra.mxu0 %vm761_vm11, %v1040_v62  ;;  %v1074_v19 = vrot.slane %v1073_v12, 2  ;;  %v1086_v20 = vrot.slane %v1085_v13, 4  ;;  %v1566_v5 = vld [vmem:[%s2111_s14] ss:$0 sm:$0xff] }
 0x414   :  { %v1082_v23 = vmax.f32 %v1080_v3, %v1081_v10  ;;  %v1238_v27 = vsel %vm551_vm4, %v1056_v18, %v1049_v14  ;;  %v1070_v43 = vmax.f32 %v1068_v7, %v1069_v21 }
 0x415   :  { %v1063_v22 = vmax.f32 %v1061_v8, %v1062_v15  ;;  %v1095_v24 = vrot.slane %v1094_v17, 2  ;;  %v1075_v25 = vmax.f32 %v1073_v12, %v1074_v19  ;;  %v1087_v26 = vmax.f32 %v1085_v13, %v1086_v20 }
 0x416   :  { %v1083_v32 = vrot.slane %v1082_v23, 1 }
 0x417   :  { %v1096_v28 = vmax.f32 %v1094_v17, %v1095_v24  ;;  %v1239_v29 = vsel %vm553_vm5, %v1063_v22, %v1238_v27  ;;  %v1076_v30 = vrot.slane %v1075_v25, 1  ;;  %v1088_v31 = vrot.slane %v1087_v26, 2 }
 0x418   :  { %v1240_v35 = vsel %vm555_vm6, %v1070_v43, %v1239_v29  ;;  %v1084_v39 = vmax.f32 %v1082_v23, %v1083_v32 }
 0x419   :  { %v1077_v33 = vmax.f32 %v1075_v25, %v1076_v30  ;;  %v1089_v34 = vmax.f32 %v1087_v26, %v1088_v31  ;;  %v1097_v36 = vrot.slane %v1096_v28, 1 }
 0x41b   :  { %v1241_v37 = vsel %vm557_vm7, %v1077_v33, %v1240_v35  ;;  %v1090_v38 = vrot.slane %v1089_v34, 1  ;;  %v1098_v41 = vmax.f32 %v1096_v28, %v1097_v36 }
 0x41c   :  { %v1242_v42 = vsel %vm559_vm8, %v1084_v39, %v1241_v37 }
 0x41d   :  { %v1091_v40 = vmax.f32 %v1089_v34, %v1090_v38 }
 0x41f   :  { %v1243_v44 = vsel %vm561_vm9, %v1091_v40, %v1242_v42 }
 0x420   :  { %v1244_v45 = vsel %vm563_vm10, %v1098_v41, %v1243_v44 }
 0x421   :  { %1759 = vmatmul.mubr.msk.f32.vlgmr.msra.gmra.mxu1 %vm761_vm11, %v1244_v45 }
 0x4c7   :  { %v1746_v46 = vpop.f32.mrf.mxu0 }
 0x4c9   :  { %v1190_v47 = vpop.f32.mrf.mxu0 }
 0x4cb   :  { %v1749_v48 = vpop.f32.mrf.mxu0 }
 0x4cd   :  { %v1200_v49 = vpop.f32.mrf.mxu0 }
 0x4cf   :  { %v1752_v50 = vpop.f32.mrf.mxu0 }
 0x4d1   :  { %v1210_v54 = vpop.f32.mrf.mxu0 }
 0x4d3   :  { %v1755_v63 = vpop.f32.mrf.mxu0 }
 0x4d5   :  { %v1220_v13 = vpop.f32.mrf.mxu0 }
 0x4e1   :  { %v1313_v51 = vpop.f32.mrf.mxu1 }
 0x4e2   :  { %v1318_v52 = vcombine.high %v1313_v51, %v1313_v51  ;;  %v1325_v53 = vrot.slane %v1313_v51, %v1973_v11 }
 0x4e3   :  { %v1760_v55 = vpop.f32.mrf.mxu1 }
 0x4e4   :  { %v1332_v56 = vrot.slane %v1318_v52, %v1973_v11  ;;  %v1333_v57 = vcombine.high %v1325_v53, %v1325_v53  ;;  %v1341_v58 = vrot.slane %v1325_v53, %v1973_v11 }
 0x4e6   :  { %v1334_v59 = vcombine.high %v1332_v56, %v1332_v56  ;;  %v1348_v60 = vrot.slane %v1332_v56, %v1973_v11  ;;  %v1355_v61 = vrot.slane %v1333_v57, %v1973_v11  ;;  %v1363_v62 = vcombine.high %v1341_v58, %v1341_v58 }
 0x4e7   :  { %v1370_v0 = vrot.slane %v1341_v58, %v1976_v16 }
 0x4e8   :  { %v1362_v1 = vrot.slane %v1334_v59, %v1973_v11  ;;  %v1364_v2 = vcombine.high %v1348_v60, %v1348_v60  ;;  %v1365_v3 = vcombine.high %v1355_v61, %v1355_v61  ;;  %v1374_v4 = vrot.slane %v1355_v61, %v1976_v16 }
 0x4e9   :  { %v1378_v6 = vrot.slane %v1363_v62, %v1976_v16  ;;  %v1386_v7 = vrot.slane %v1348_v60, %v1976_v16  ;;  %v1407_v8 = vadd.f32 %v1370_v0, %v1190_v47 }
 0x4ea   :  { %v1366_v9 = vcombine.high %v1362_v1, %v1362_v1  ;;  %v1382_v10 = vrot.slane %v1365_v3, %v1976_v16  ;;  %v1390_v12 = vrot.slane %v1362_v1, %v1976_v16  ;;  %v1394_v11 = vrot.slane %v1364_v2, %v1976_v16 }
 0x4eb   :  { %v1408_v14 = vadd.f32 %v1746_v46, %v1374_v4  ;;  %v1409_v15 = vadd.f32 %v1378_v6, %v1200_v49  ;;  %v1411_v17 = vadd.f32 %v1386_v7, %v1210_v54  ;;  %v1422_v18 = vadd.f32 %v1566_v5, %v1407_v8 }
 0x4ec   :  { %v1398_v19 = vrot.slane %v1366_v9, %v1976_v16  ;;  %v1410_v20 = vadd.f32 %v1749_v48, %v1382_v10  ;;  %v1412_v21 = vadd.f32 %v1752_v50, %v1390_v12  ;;  %v1413_v22 = vadd.f32 %v1394_v11, %v1220_v13 }
 0x4ed   :  { %v1423_v23 = vadd.f32 %v1566_v5, %v1408_v14  ;;  %v1424_v24 = vadd.f32 %v1566_v5, %v1409_v15  ;;  %v1426_v25 = vadd.f32 %v1566_v5, %v1411_v17  ;;  %v1431_v26 = vsel %vm1430_vm12, %v1422_v18, -inf }
 0x4ee   :  { %v1414_v27 = vadd.f32 %v1755_v63, %v1398_v19  ;;  %v1425_v28 = vadd.f32 %v1566_v5, %v1410_v20  ;;  %v1427_v29 = vadd.f32 %v1566_v5, %v1412_v21  ;;  %v1428_v30 = vadd.f32 %v1566_v5, %v1413_v22 }
 0x4ef   :  { %v1432_v31 = vrot.slane %v1431_v26, 4  ;;  %v1438_v43 = vsel %vm1430_vm12, %v1423_v23, -inf  ;;  %v1445_v32 = vsel %vm1430_vm12, %v1424_v24, -inf  ;;  %v1459_v33 = vsel %vm1430_vm12, %v1426_v25, -inf }
 0x4f0   :  { %v1429_v16 = vadd.f32 %v1566_v5, %v1414_v27  ;;  %v1439_v34 = vrot.slane %v1438_v43, 4  ;;  %v1446_v35 = vrot.slane %v1445_v32, 4  ;;  %v1452_v36 = vsel %vm1430_vm12, %v1425_v28, -inf }
 0x4f1   :  { %v1433_v37 = vmax.f32 %v1431_v26, %v1432_v31  ;;  %v1453_v38 = vrot.slane %v1452_v36, 4  ;;  %v1460_v39 = vrot.slane %v1459_v33, 4  ;;  %v1466_v40 = vsel %vm1430_vm12, %v1427_v29, -inf }
 0x4f2   :  { %v1440_v41 = vmax.f32 %v1438_v43, %v1439_v34  ;;  %v1447_v42 = vmax.f32 %v1445_v32, %v1446_v35  ;;  %v1467_v44 = vrot.slane %v1466_v40, 4  ;;  %v1473_v45 = vsel %vm1430_vm12, %v1428_v30, -inf }
 0x4f3   :  { %v1434_v46 = vrot.slane %v1433_v37, 2  ;;  %v1454_v47 = vmax.f32 %v1452_v36, %v1453_v38  ;;  %v1461_v48 = vmax.f32 %v1459_v33, %v1460_v39  ;;  %v1474_v49 = vrot.slane %v1473_v45, 4 }
 0x4f4   :  { %v1441_v50 = vrot.slane %v1440_v41, 2  ;;  %v1448_v51 = vrot.slane %v1447_v42, 2  ;;  %v1468_v52 = vmax.f32 %v1466_v40, %v1467_v44  ;;  %v1480_v53 = vsel %vm1430_vm12, %v1429_v16, -inf }
 0x4f5   :  { %v1435_v54 = vmax.f32 %v1433_v37, %v1434_v46  ;;  %v1455_v55 = vrot.slane %v1454_v47, 2  ;;  %v1462_v56 = vrot.slane %v1461_v48, 2  ;;  %v1475_v57 = vmax.f32 %v1473_v45, %v1474_v49 }
 0x4f6   :  { %v1442_v58 = vmax.f32 %v1440_v41, %v1441_v50  ;;  %v1449_v59 = vmax.f32 %v1447_v42, %v1448_v51  ;;  %v1469_v60 = vrot.slane %v1468_v52, 2  ;;  %v1481_v61 = vrot.slane %v1480_v53, 4 }
 0x4f7   :  { %v1436_v62 = vrot.slane %v1435_v54, 1  ;;  %v1456_v63 = vmax.f32 %v1454_v47, %v1455_v55  ;;  %v1463_v0 = vmax.f32 %v1461_v48, %v1462_v56  ;;  %v1476_v1 = vrot.slane %v1475_v57, 2 }
 0x4f8   :  { %v1443_v2 = vrot.slane %v1442_v58, 1  ;;  %v1450_v3 = vrot.slane %v1449_v59, 1  ;;  %v1470_v4 = vmax.f32 %v1468_v52, %v1469_v60  ;;  %v1482_v5 = vmax.f32 %v1480_v53, %v1481_v61 }
 0x4f9   :  { %v1437_v6 = vmax.f32 %v1435_v54, %v1436_v62  ;;  %v1457_v7 = vrot.slane %v1456_v63, 1  ;;  %v1464_v8 = vrot.slane %v1463_v0, 1  ;;  %v1477_v9 = vmax.f32 %v1475_v57, %v1476_v1 }
 0x4fa   :  { %v1444_v10 = vmax.f32 %v1442_v58, %v1443_v2  ;;  %v1451_v12 = vmax.f32 %v1449_v59, %v1450_v3  ;;  %v1471_v11 = vrot.slane %v1470_v4, 1  ;;  %v1483_v13 = vrot.slane %v1482_v5, 2 }
 0x4fb   :  { %v1458_v14 = vmax.f32 %v1456_v63, %v1457_v7  ;;  %v1478_v15 = vrot.slane %v1477_v9, 1  ;;  %v1465_v19 = vmax.f32 %v1463_v0, %v1464_v8 }
 0x4fc   :  { %v1484_v17 = vmax.f32 %v1482_v5, %v1483_v13  ;;  %v1495_v18 = vsel %vm551_vm4, %v1444_v10, %v1437_v6  ;;  %v1472_v21 = vmax.f32 %v1470_v4, %v1471_v11 }
 0x4fd   :  { %v1496_v20 = vsel %vm553_vm5, %v1451_v12, %v1495_v18  ;;  %v1479_v24 = vmax.f32 %v1477_v9, %v1478_v15 }
 0x4fe   :  { %v1485_v22 = vrot.slane %v1484_v17, 1  ;;  %v1497_v23 = vsel %vm555_vm6, %v1458_v14, %v1496_v20 }
 0x4ff   :  { %v1498_v25 = vsel %vm557_vm7, %v1465_v19, %v1497_v23 }
 0x500   :  { %v1486_v26 = vmax.f32 %v1484_v17, %v1485_v22  ;;  %v1499_v27 = vsel %vm559_vm8, %v1472_v21, %v1498_v25 }
 0x501   :  { %v1500_v28 = vsel %vm561_vm9, %v1479_v24, %v1499_v27 }
 0x502   :  { %v1501_v29 = vsel %vm563_vm10, %v1486_v26, %v1500_v28 }
 0x503   :  { %1503 = vst.msk [vmem:[%s2112_s15] sm:$0xff] %vm1430_vm12, %v1501_v29 }

// kernel: vectornet_prediction_forward.4
= control target key start
LH: loop header
LB: loop body
LE: loop exit
PB: predicated region body
PF: predicated region fallthrough
CT: control target
= control target key end

     0   :  { %v2314_v0 = vmov 0.0   ;;  %vm2315_vm0 = vmmov 0   ;;  %vm30_vm1 = vcmask 130048   ;;  %s2317_s25 = smov 112   ;;  %s2318_s26 = smov 104   ;;  %vm118_vm2 = vcmask 64512   ;;  %s2587_s1 = inlined_call_operand.vmem [shape: f32[16,48], index: 1, kind: input, shape index: {}]   ;;  %s2588_s0 = inlined_call_operand.vmem [shape: f32[8,16], index: 0, kind: input, shape index: {}]   ;;  %s2589_s2 = inlined_call_operand.vmem [shape: f32[1,48], index: 2, kind: input, shape index: {}]   ;;  %s2590_s3 = inlined_call_operand.vmem [shape: f32[16,16], index: 3, kind: input, shape index: {}]   ;;  %s2591_s4 = inlined_call_operand.vmem [shape: f32[1,16], index: 4, kind: input, shape index: {}]   ;;  %s2592_s5 = inlined_call_operand.vmem [shape: f32[4,2,16], index: 5, kind: output, shape index: {}]  }
   0x1   :  { %2148 = vmatprep.subr.mxu0 %v2314_v0  ;;  %v22_v1 = vld [vmem:[%s2587_s1 + $0x8] sm:$0xff]  ;;  %v21_v2 = vld [vmem:[%s2587_s1] sm:$0xff]  ;;  %2152 = vmatprep.mubr.msk.f32.mxu0 %vm2315_vm0, %v2314_v0  ;;  %vm212_vm3 = vcmask 1041408   ;;  %vm194_vm4 = vcmask 9216   ;;  %s2320_s27 = smov 120   ;;  %vm208_vm5 = vcmask 15360  }
   0x2   :  { %2149 = vmatpush3.msra.mxu0 %v22_v1  ;;  %v20_v3 = vld [vmem:[%s2588_s0] sm:$0xff]  ;;  %2155 = vmatprep.subr.mxu1 %v2314_v0  ;;  %s2316_s0 = smov 96   ;;  %v2427_v38 = vld [vmem:[%s2590_s3 + $0x8] sm:$0xff]  ;;  %vm599_vm6 = vcmask 123904  }
   0x3   :  { %2150 = vmatprep.subr.mxu0 %v2314_v0  ;;  %2157 = vmatprep.mubr.msk.f32.mxu1 %vm2315_vm0, %v2314_v0  ;;  %v2051_v4 = vld [vmem:[%s2589_s2] ss:$0 sm:$0xff]  ;;  %s2319_s2 = smov 88  }
   0x4   :  { %2151 = vmatpush3.msra.mxu0 %v21_v2  ;;  %v2401_v19 = vld [vmem:[%s2590_s3] sm:$0xff] }
   0x5   :  { %2153 = vmatmul.mubr.msk.f32.vlgmr.msra.gmra.mxu0 %vm30_vm1, %v20_v3  ;;  %2160 = vmatprep.subr.mxu0 %v2314_v0  ;;  %v2454_v56 = vld [vmem:[%s2591_s4] ss:$0 sm:$0xff] }
   0x6   :  { %2162 = vmatprep.mubr.msk.f32.mxu0 %vm2315_vm0, %v2314_v0 }
  0xc5   :  { %v100_v5 = vpop.f32.mrf.mxu0 }
  0xc6   :  { %v2373_v6 = vadd.f32 %v2051_v4, %v100_v5 }
  0xc7   :  { %v2154_v7 = vpop.f32.mrf.mxu0 }
  0xc8   :  { %206 = vrot.lane.b32.xlu1 %v2373_v6, %s2316_s0  ;;  %116 = vrot.lane.b32.xlu0 %v2373_v6, %s2317_s25  ;;  %v2384_v10 = vmul.f32 0.35355338, %v2373_v6  ;;  %v602_v31 = vrot.slane %v2373_v6, 2 }
  0xca   :  { %v601_v44 = vrot.slane %v2384_v10, 2 }
  0xcc   :  { %361 = vrot.lane.b32.xlu1 %v2373_v6, %s2318_s26 }
 0x13a   :  { %v207_v8 = vpop.permute.xlu1 %206  ;;  %v117_v9 = vpop.permute.xlu0 %116 }
 0x13b   :  { %2156 = vmatpush3.xpose.msk.msra.mxu1 %vm118_vm2, %v117_v9  ;;  %2161 = vmatpush3.msk.msra.mxu0 %vm212_vm3, %v207_v8 }
 0x13c   :  { %2170 = vmatprep.subr.mxu0 %v2314_v0  ;;  %2165 = vmatprep.subr.mxu1 %v2314_v0 }
 0x13e   :  { %2158 = vmatmul.mubr.msk.f32.vlgmr.msra.gmra.mxu1 %vm118_vm2, %v2384_v10  ;;  %v362_v20 = vpop.permute.xlu1 %361 }
 0x13f   :  { %2167 = vmatprep.mubr.msk.f32.mxu1 %vm2315_vm0, %v2314_v0  ;;  %2166 = vmatpush3.msra.mxu1 %v2401_v19 }
 0x140   :  { %2175 = vmatprep.subr.mxu1 %v2314_v0 }
 0x1fe   :  { %v190_v11 = vpop.f32.mrf.mxu1 }
 0x1ff   :  { %v195_v12 = vsel %vm194_vm4, %v190_v11, -inf }
 0x200   :  { %196 = vmax.xlane.f32.xlu0 %v195_v12  ;;  %v2159_v13 = vpop.f32.mrf.mxu1 }
 0x216   :  { %448 = vrot.lane.b32.xlu0 %v2373_v6, %s2319_s2 }
 0x289   :  { %v197_v14 = vpop.xlane.xlu0 %196 }
 0x28a   :  { %v198_v15 = vsub.f32 %v190_v11, %v197_v14  ;;  %v2478_v11 = vrot.slane %v2373_v6, 4 }
 0x28c   :  { %v199_v16 = vmul.f32 1.442695, %v198_v15 }
 0x28d   :  { %v449_v26 = vpop.permute.xlu0 %448 }
 0x28e   :  { %2282 = vpow2.f32 %v199_v16 }
 0x29b   :  { %v2283_v17 = vpop.eup %2282 }
 0x29c   :  { %v201_v18 = vsel %vm194_vm4, %v2283_v17, 0.0 }
 0x29d   :  { %202 = vadd.xlane.f32.xlu1 %v201_v18 }
 0x2ae   :  { %359 = vrot.lane.b32.xlu1 %v2384_v10, %s2320_s27 }
 0x326   :  { %v203_v21 = vpop.xlane.xlu1 %202 }
 0x327   :  { %2284 = vrcp.f32 %v203_v21 }
 0x32a   :  { %v360_v24 = vpop.permute.xlu1 %359 }
 0x334   :  { %v2285_v22 = vpop.eup %2284 }
 0x335   :  { %v205_v23 = vmul.f32 %v2285_v22, %v2283_v17 }
 0x337   :  { %2163 = vmatmul.mubr.msk.f32.vlgmr.msra.gmra.mxu0 %vm208_vm5, %v205_v23 }
 0x338   :  { %2171 = vmatpush3.xpose.msk.msra.mxu0 %vm118_vm2, %v362_v20  ;;  %2172 = vmatprep.mubr.msk.f32.mxu0 %vm2315_vm0, %v2314_v0 }
 0x339   :  { %2180 = vmatprep.subr.mxu0 %v2314_v0 }
 0x33b   :  { %2173 = vmatmul.mubr.msk.f32.vlgmr.msra.gmra.mxu0 %vm118_vm2, %v360_v24  ;;  %v1083_v24 = vrot.slane %v2384_v10, 4 }
 0x33c   :  { %2182 = vmatprep.mubr.msk.f32.mxu0 %vm2315_vm0, %v2314_v0  ;;  %2181 = vmatpush3.msra.mxu0 %v2427_v38 }
 0x33d   :  { %2190 = vmatprep.subr.mxu0 %v2314_v0 }
 0x3f7   :  { %v281_v25 = vpop.f32.mrf.mxu0 }
 0x3f8   :  { %2168 = vmatmul.mubr.msk.f32.vlgmr.msra.gmra.mxu1 %vm118_vm2, %v281_v25 }
 0x3f9   :  { %2176 = vmatpush3.msk.msra.mxu1 %vm212_vm3, %v449_v26  ;;  %v2164_v27 = vpop.f32.mrf.mxu0  ;;  %2177 = vmatprep.mubr.msk.f32.mxu1 %vm2315_vm0, %v2314_v0 }
 0x3fa   :  { %2185 = vmatprep.subr.mxu1 %v2314_v0 }
 0x3fb   :  { %v433_v28 = vpop.f32.mrf.mxu0 }
 0x3fc   :  { %v437_v29 = vsel %vm194_vm4, %v433_v28, -inf }
 0x3fd   :  { %438 = vmax.xlane.f32.xlu1 %v437_v29  ;;  %v2174_v30 = vpop.f32.mrf.mxu0 }
 0x40e   :  { %690 = vrot.lane.b32.xlu1 %v602_v31, %s2316_s0 }
 0x412   :  { %843 = vrot.lane.b32.xlu1 %v602_v31, %s2318_s26 }
 0x486   :  { %v439_v32 = vpop.xlane.xlu1 %438 }
 0x487   :  { %v440_v33 = vsub.f32 %v433_v28, %v439_v32 }
 0x489   :  { %v441_v34 = vmul.f32 1.442695, %v440_v33 }
 0x48a   :  { %v691_v46 = vpop.permute.xlu1 %690 }
 0x48b   :  { %2286 = vpow2.f32 %v441_v34 }
 0x48e   :  { %v844_v61 = vpop.permute.xlu1 %843 }
 0x498   :  { %v2287_v35 = vpop.eup %2286 }
 0x499   :  { %v443_v36 = vsel %vm194_vm4, %v2287_v35, 0.0 }
 0x49a   :  { %444 = vadd.xlane.f32.xlu0 %v443_v36 }
 0x4b0   :  { %603 = vrot.lane.b32.xlu0 %v602_v31, %s2317_s25 }
 0x4b8   :  { %v354_v37 = vpop.f32.mrf.mxu1 }
 0x4b9   :  { %v358_v57 = vadd.f32 %v2454_v56, %v354_v37 }
 0x4ba   :  { %v2169_v39 = vpop.f32.mrf.mxu1 }
 0x523   :  { %v445_v40 = vpop.xlane.xlu0 %444 }
 0x524   :  { %2288 = vrcp.f32 %v445_v40 }
 0x527   :  { %v604_v43 = vpop.permute.xlu0 %603 }
 0x531   :  { %v2289_v41 = vpop.eup %2288 }
 0x532   :  { %v447_v42 = vmul.f32 %v2289_v41, %v2287_v35 }
 0x534   :  { %2178 = vmatmul.mubr.msk.f32.vlgmr.msra.gmra.mxu1 %vm208_vm5, %v447_v42 }
 0x535   :  { %2186 = vmatpush3.xpose.msk.msra.mxu1 %vm118_vm2, %v604_v43  ;;  %2187 = vmatprep.mubr.msk.f32.mxu1 %vm2315_vm0, %v2314_v0 }
 0x536   :  { %2195 = vmatprep.subr.mxu1 %v2314_v0 }
 0x538   :  { %2188 = vmatmul.mubr.msk.f32.vlgmr.msra.gmra.mxu1 %vm118_vm2, %v601_v44 }
 0x539   :  { %2196 = vmatpush3.msra.mxu1 %v2401_v19  ;;  %2197 = vmatprep.mubr.msk.f32.mxu1 %vm2315_vm0, %v2314_v0 }
 0x53a   :  { %2205 = vmatprep.subr.mxu1 %v2314_v0 }
 0x5f4   :  { %v521_v45 = vpop.f32.mrf.mxu1 }
 0x5f5   :  { %2183 = vmatmul.mubr.msk.f32.vlgmr.msra.gmra.mxu0 %vm118_vm2, %v521_v45 }
 0x5f6   :  { %2191 = vmatpush3.msk.msra.mxu0 %vm212_vm3, %v691_v46  ;;  %v2179_v47 = vpop.f32.mrf.mxu1  ;;  %2192 = vmatprep.mubr.msk.f32.mxu0 %vm2315_vm0, %v2314_v0 }
 0x5f7   :  { %2200 = vmatprep.subr.mxu0 %v2314_v0 }
 0x5f8   :  { %v675_v48 = vpop.f32.mrf.mxu1 }
 0x5f9   :  { %v679_v49 = vsel %vm194_vm4, %v675_v48, -inf }
 0x5fa   :  { %680 = vmax.xlane.f32.xlu0 %v679_v49  ;;  %v2189_v50 = vpop.f32.mrf.mxu1 }
 0x610   :  { %930 = vrot.lane.b32.xlu0 %v602_v31, %s2319_s2 }
 0x683   :  { %v681_v51 = vpop.xlane.xlu0 %680 }
 0x684   :  { %v682_v52 = vsub.f32 %v675_v48, %v681_v51  ;;  %v2528_v51 = vrot.slane %v2373_v6, 6 }
 0x686   :  { %v683_v53 = vmul.f32 1.442695, %v682_v52 }
 0x687   :  { %v931_v4 = vpop.permute.xlu0 %930 }
 0x688   :  { %2290 = vpow2.f32 %v683_v53 }
 0x695   :  { %v2291_v54 = vpop.eup %2290 }
 0x696   :  { %v685_v55 = vsel %vm194_vm4, %v2291_v54, 0.0 }
 0x697   :  { %686 = vadd.xlane.f32.xlu1 %v685_v55 }
 0x6a8   :  { %841 = vrot.lane.b32.xlu1 %v601_v44, %s2320_s27 }
 0x6b5   :  { %v594_v58 = vpop.f32.mrf.mxu0 }
 0x6b6   :  { %v598_v59 = vadd.f32 %v594_v58, %v358_v57 }
 0x6b7   :  { %v2184_v60 = vpop.f32.mrf.mxu0 }
 0x6b8   :  { %600 = vst.msk [vmem:[%s2592_s5] sm:$0x3] %vm599_vm6, %v598_v59 }
 0x720   :  { %v687_v62 = vpop.xlane.xlu1 %686 }
 0x721   :  { %2292 = vrcp.f32 %v687_v62 }
 0x724   :  { %v842_v2 = vpop.permute.xlu1 %841 }
 0x72e   :  { %v2293_v63 = vpop.eup %2292 }
 0x72f   :  { %v689_v1 = vmul.f32 %v2293_v63, %v2291_v54 }
 0x731   :  { %2193 = vmatmul.mubr.msk.f32.vlgmr.msra.gmra.mxu0 %vm208_vm5, %v689_v1  ;;  %v1565_v1 = vrot.slane %v2384_v10, 6 }
 0x732   :  { %2201 = vmatpush3.xpose.msk.msra.mxu0 %vm118_vm2, %v844_v61  ;;  %2202 = vmatprep.mubr.msk.f32.mxu0 %vm2315_vm0, %v2314_v0 }
 0x733   :  { %2210 = vmatprep.subr.mxu0 %v2314_v0 }
 0x735   :  { %2203 = vmatmul.mubr.msk.f32.vlgmr.msra.gmra.mxu0 %vm118_vm2, %v842_v2 }
 0x736   :  { %2211 = vmatpush3.msra.mxu0 %v2427_v38  ;;  %2212 = vmatprep.mubr.msk.f32.mxu0 %vm2315_vm0, %v2314_v0 }
 0x737   :  { %2220 = vmatprep.subr.mxu0 %v2314_v0 }
 0x7f1   :  { %v763_v3 = vpop.f32.mrf.mxu0 }
 0x7f2   :  { %2198 = vmatmul.mubr.msk.f32.vlgmr.msra.gmra.mxu1 %vm118_vm2, %v763_v3 }
 0x7f3   :  { %2206 = vmatpush3.msk.msra.mxu1 %vm212_vm3, %v931_v4  ;;  %v2194_v5 = vpop.f32.mrf.mxu0  ;;  %2207 = vmatprep.mubr.msk.f32.mxu1 %vm2315_vm0, %v2314_v0 }
 0x7f4   :  { %2215 = vmatprep.subr.mxu1 %v2314_v0 }
 0x7f5   :  { %v915_v7 = vpop.f32.mrf.mxu0 }
 0x7f6   :  { %v919_v8 = vsel %vm194_vm4, %v915_v7, -inf }
 0x7f7   :  { %920 = vmax.xlane.f32.xlu1 %v919_v8  ;;  %v2204_v9 = vpop.f32.mrf.mxu0 }
 0x808   :  { %1172 = vrot.lane.b32.xlu1 %v2478_v11, %s2316_s0 }
 0x80c   :  { %1325 = vrot.lane.b32.xlu1 %v2478_v11, %s2318_s26 }
 0x880   :  { %v921_v12 = vpop.xlane.xlu1 %920 }
 0x881   :  { %v922_v13 = vsub.f32 %v915_v7, %v921_v12 }
 0x883   :  { %v923_v14 = vmul.f32 1.442695, %v922_v13 }
 0x884   :  { %v1173_v26 = vpop.permute.xlu1 %1172 }
 0x885   :  { %2294 = vpow2.f32 %v923_v14 }
 0x888   :  { %v1326_v41 = vpop.permute.xlu1 %1325 }
 0x892   :  { %v2295_v15 = vpop.eup %2294 }
 0x893   :  { %v925_v16 = vsel %vm194_vm4, %v2295_v15, 0.0 }
 0x894   :  { %926 = vadd.xlane.f32.xlu0 %v925_v16 }
 0x8aa   :  { %1085 = vrot.lane.b32.xlu0 %v2478_v11, %s2317_s25 }
 0x8b2   :  { %v836_v17 = vpop.f32.mrf.mxu1 }
 0x8b3   :  { %v840_v36 = vadd.f32 %v2454_v56, %v836_v17 }
 0x8b4   :  { %v2199_v18 = vpop.f32.mrf.mxu1 }
 0x91d   :  { %v927_v20 = vpop.xlane.xlu0 %926 }
 0x91e   :  { %2296 = vrcp.f32 %v927_v20 }
 0x921   :  { %v1086_v23 = vpop.permute.xlu0 %1085 }
 0x92b   :  { %v2297_v21 = vpop.eup %2296 }
 0x92c   :  { %v929_v22 = vmul.f32 %v2297_v21, %v2295_v15 }
 0x92e   :  { %2208 = vmatmul.mubr.msk.f32.vlgmr.msra.gmra.mxu1 %vm208_vm5, %v929_v22 }
 0x92f   :  { %2216 = vmatpush3.xpose.msk.msra.mxu1 %vm118_vm2, %v1086_v23  ;;  %2217 = vmatprep.mubr.msk.f32.mxu1 %vm2315_vm0, %v2314_v0 }
 0x930   :  { %2225 = vmatprep.subr.mxu1 %v2314_v0 }
 0x932   :  { %2218 = vmatmul.mubr.msk.f32.vlgmr.msra.gmra.mxu1 %vm118_vm2, %v1083_v24 }
 0x933   :  { %2226 = vmatpush3.msra.mxu1 %v2401_v19  ;;  %2227 = vmatprep.mubr.msk.f32.mxu1 %vm2315_vm0, %v2314_v0 }
 0x934   :  { %2235 = vmatprep.subr.mxu1 %v2314_v0 }
 0x9ee   :  { %v1003_v25 = vpop.f32.mrf.mxu1 }
 0x9ef   :  { %2213 = vmatmul.mubr.msk.f32.vlgmr.msra.gmra.mxu0 %vm118_vm2, %v1003_v25 }
 0x9f0   :  { %2221 = vmatpush3.msk.msra.mxu0 %vm212_vm3, %v1173_v26  ;;  %v2209_v27 = vpop.f32.mrf.mxu1  ;;  %2222 = vmatprep.mubr.msk.f32.mxu0 %vm2315_vm0, %v2314_v0 }
 0x9f1   :  { %2230 = vmatprep.subr.mxu0 %v2314_v0 }
 0x9f2   :  { %v1157_v28 = vpop.f32.mrf.mxu1 }
 0x9f3   :  { %v1161_v29 = vsel %vm194_vm4, %v1157_v28, -inf }
 0x9f4   :  { %1162 = vmax.xlane.f32.xlu0 %v1161_v29  ;;  %v2219_v30 = vpop.f32.mrf.mxu1 }
 0xa7d   :  { %v1163_v31 = vpop.xlane.xlu0 %1162 }
 0xa7e   :  { %v1164_v32 = vsub.f32 %v1157_v28, %v1163_v31 }
 0xa80   :  { %v1165_v33 = vmul.f32 1.442695, %v1164_v32 }
 0xa82   :  { %2298 = vpow2.f32 %v1165_v33 }
 0xa8f   :  { %v2299_v34 = vpop.eup %2298 }
 0xa90   :  { %v1167_v35 = vsel %vm194_vm4, %v2299_v34, 0.0 }
 0xa91   :  { %1168 = vadd.xlane.f32.xlu1 %v1167_v35 }
 0xaa2   :  { %1323 = vrot.lane.b32.xlu1 %v1083_v24, %s2320_s27 }
 0xaaf   :  { %v1076_v37 = vpop.f32.mrf.mxu0 }
 0xab0   :  { %v1080_v39 = vadd.f32 %v1076_v37, %v840_v36 }
 0xab1   :  { %v2214_v40 = vpop.f32.mrf.mxu0 }
 0xab2   :  { %2074 = vst.msk [vmem:[%s2592_s5 + $0x2] sm:$0x3] %vm599_vm6, %v1080_v39 }
 0xb1a   :  { %v1169_v42 = vpop.xlane.xlu1 %1168 }
 0xb1b   :  { %2300 = vrcp.f32 %v1169_v42 }
 0xb1e   :  { %v1324_v45 = vpop.permute.xlu1 %1323 }
 0xb28   :  { %v2301_v43 = vpop.eup %2300 }
 0xb29   :  { %v1171_v44 = vmul.f32 %v2301_v43, %v2299_v34 }
 0xb2b   :  { %2223 = vmatmul.mubr.msk.f32.vlgmr.msra.gmra.mxu0 %vm208_vm5, %v1171_v44 }
 0xb2c   :  { %2231 = vmatpush3.xpose.msk.msra.mxu0 %vm118_vm2, %v1326_v41  ;;  %2232 = vmatprep.mubr.msk.f32.mxu0 %vm2315_vm0, %v2314_v0 }
 0xb2d   :  { %2240 = vmatprep.subr.mxu0 %v2314_v0 }
 0xb2f   :  { %2233 = vmatmul.mubr.msk.f32.vlgmr.msra.gmra.mxu0 %vm118_vm2, %v1324_v45 }
 0xb30   :  { %2241 = vmatpush3.msra.mxu0 %v2427_v38  ;;  %2242 = vmatprep.mubr.msk.f32.mxu0 %vm2315_vm0, %v2314_v0 }
 0xb31   :  { %2250 = vmatprep.subr.mxu0 %v2314_v0 }
 0xbeb   :  { %v1245_v46 = vpop.f32.mrf.mxu0 }
 0xbec   :  { %2228 = vmatmul.mubr.msk.f32.vlgmr.msra.gmra.mxu1 %vm118_vm2, %v1245_v46 }
 0xbed   :  { %v2224_v47 = vpop.f32.mrf.mxu0  ;;  %2237 = vmatprep.mubr.msk.f32.mxu1 %vm2315_vm0, %v2314_v0 }
 0xbef   :  { %v1397_v48 = vpop.f32.mrf.mxu0 }
 0xbf0   :  { %v1401_v49 = vsel %vm194_vm4, %v1397_v48, -inf }
 0xbf1   :  { %1402 = vmax.xlane.f32.xlu0 %v1401_v49  ;;  %v2234_v50 = vpop.f32.mrf.mxu0 }
 0xc07   :  { %1412 = vrot.lane.b32.xlu0 %v2478_v11, %s2319_s2 }
 0xc0b   :  { %1567 = vrot.lane.b32.xlu0 %v2528_v51, %s2317_s25 }
 0xc7a   :  { %v1403_v52 = vpop.xlane.xlu0 %1402 }
 0xc7b   :  { %v1404_v53 = vsub.f32 %v1397_v48, %v1403_v52 }
 0xc7d   :  { %v1405_v54 = vmul.f32 1.442695, %v1404_v53 }
 0xc7e   :  { %v1413_v55 = vpop.permute.xlu0 %1412 }
 0xc7f   :  { %2302 = vpow2.f32 %v1405_v54  ;;  %2236 = vmatpush3.msk.msra.mxu1 %vm212_vm3, %v1413_v55 }
 0xc80   :  { %2245 = vmatprep.subr.mxu1 %v2314_v0 }
 0xc82   :  { %v1568_v63 = vpop.permute.xlu0 %1567 }
 0xc8c   :  { %v2303_v57 = vpop.eup %2302 }
 0xc8d   :  { %v1407_v58 = vsel %vm194_vm4, %v2303_v57, 0.0 }
 0xc8e   :  { %1408 = vadd.xlane.f32.xlu1 %v1407_v58 }
 0xc9f   :  { %1654 = vrot.lane.b32.xlu1 %v2528_v51, %s2316_s0 }
 0xcac   :  { %v1318_v6 = vpop.f32.mrf.mxu1 }
 0xcad   :  { %v1322_v13 = vadd.f32 %v2454_v56, %v1318_v6 }
 0xcae   :  { %v2229_v59 = vpop.f32.mrf.mxu1 }
 0xd17   :  { %v1409_v60 = vpop.xlane.xlu1 %1408 }
 0xd18   :  { %2304 = vrcp.f32 %v1409_v60 }
 0xd1b   :  { %v1655_v3 = vpop.permute.xlu1 %1654 }
 0xd25   :  { %v2305_v61 = vpop.eup %2304 }
 0xd26   :  { %v1411_v62 = vmul.f32 %v2305_v61, %v2303_v57 }
 0xd28   :  { %2238 = vmatmul.mubr.msk.f32.vlgmr.msra.gmra.mxu1 %vm208_vm5, %v1411_v62 }
 0xd29   :  { %2246 = vmatpush3.xpose.msk.msra.mxu1 %vm118_vm2, %v1568_v63  ;;  %2247 = vmatprep.mubr.msk.f32.mxu1 %vm2315_vm0, %v2314_v0 }
 0xd2a   :  { %2255 = vmatprep.subr.mxu1 %v2314_v0 }
 0xd2c   :  { %2248 = vmatmul.mubr.msk.f32.vlgmr.msra.gmra.mxu1 %vm118_vm2, %v1565_v1 }
 0xd2d   :  { %2256 = vmatpush3.msra.mxu1 %v2401_v19  ;;  %2257 = vmatprep.mubr.msk.f32.mxu1 %vm2315_vm0, %v2314_v0 }
 0xd2e   :  { %2265 = vmatprep.subr.mxu1 %v2314_v0 }
 0xde8   :  { %v1485_v2 = vpop.f32.mrf.mxu1 }
 0xde9   :  { %2243 = vmatmul.mubr.msk.f32.vlgmr.msra.gmra.mxu0 %vm118_vm2, %v1485_v2 }
 0xdea   :  { %2251 = vmatpush3.msk.msra.mxu0 %vm212_vm3, %v1655_v3  ;;  %v2239_v4 = vpop.f32.mrf.mxu1  ;;  %2252 = vmatprep.mubr.msk.f32.mxu0 %vm2315_vm0, %v2314_v0 }
 0xdeb   :  { %2260 = vmatprep.subr.mxu0 %v2314_v0 }
 0xdec   :  { %v1639_v10 = vpop.f32.mrf.mxu1 }
 0xded   :  { %v1643_v19 = vsel %vm194_vm4, %v1639_v10, -inf }
 0xdee   :  { %1644 = vmax.xlane.f32.xlu0 %v1643_v19  ;;  %v2249_v5 = vpop.f32.mrf.mxu1 }
 0xe04   :  { %1805 = vrot.lane.b32.xlu0 %v1565_v1, %s2320_s27 }
 0xe77   :  { %v1645_v7 = vpop.xlane.xlu0 %1644 }
 0xe78   :  { %v1646_v8 = vsub.f32 %v1639_v10, %v1645_v7 }
 0xe7a   :  { %v1647_v9 = vmul.f32 1.442695, %v1646_v8 }
 0xe7b   :  { %v1806_v22 = vpop.permute.xlu0 %1805 }
 0xe7c   :  { %2306 = vpow2.f32 %v1647_v9 }
 0xe89   :  { %v2307_v11 = vpop.eup %2306 }
 0xe8a   :  { %v1649_v12 = vsel %vm194_vm4, %v2307_v11, 0.0 }
 0xe8b   :  { %1650 = vadd.xlane.f32.xlu1 %v1649_v12 }
 0xe9c   :  { %1807 = vrot.lane.b32.xlu1 %v2528_v51, %s2318_s26 }
 0xea9   :  { %v1558_v14 = vpop.f32.mrf.mxu0 }
 0xeaa   :  { %v1562_v15 = vadd.f32 %v1558_v14, %v1322_v13 }
 0xeab   :  { %v2244_v16 = vpop.f32.mrf.mxu0 }
 0xeac   :  { %2085 = vst.msk [vmem:[%s2592_s5 + $0x4] sm:$0x3] %vm599_vm6, %v1562_v15 }
 0xf14   :  { %v1651_v17 = vpop.xlane.xlu1 %1650 }
 0xf15   :  { %2308 = vrcp.f32 %v1651_v17 }
 0xf18   :  { %v1808_v21 = vpop.permute.xlu1 %1807 }
 0xf22   :  { %v2309_v18 = vpop.eup %2308 }
 0xf23   :  { %v1653_v20 = vmul.f32 %v2309_v18, %v2307_v11 }
 0xf25   :  { %2253 = vmatmul.mubr.msk.f32.vlgmr.msra.gmra.mxu0 %vm208_vm5, %v1653_v20 }
 0xf26   :  { %2261 = vmatpush3.xpose.msk.msra.mxu0 %vm118_vm2, %v1808_v21  ;;  %2262 = vmatprep.mubr.msk.f32.mxu0 %vm2315_vm0, %v2314_v0 }
 0xf27   :  { %2270 = vmatprep.subr.mxu0 %v2314_v0 }
 0xf29   :  { %2263 = vmatmul.mubr.msk.f32.vlgmr.msra.gmra.mxu0 %vm118_vm2, %v1806_v22 }
 0xf2a   :  { %2271 = vmatpush3.msra.mxu0 %v2427_v38  ;;  %2272 = vmatprep.mubr.msk.f32.mxu0 %vm2315_vm0, %v2314_v0 }
 0xfe5   :  { %v1727_v23 = vpop.f32.mrf.mxu0 }
 0xfe6   :  { %2258 = vmatmul.mubr.msk.f32.vlgmr.msra.gmra.mxu1 %vm118_vm2, %v1727_v23 }
 0xfe7   :  { %v2254_v24 = vpop.f32.mrf.mxu0  ;;  %2267 = vmatprep.mubr.msk.f32.mxu1 %vm2315_vm0, %v2314_v0 }
 0xfe9   :  { %v1879_v25 = vpop.f32.mrf.mxu0 }
 0xfea   :  { %v1883_v26 = vsel %vm194_vm4, %v1879_v25, -inf }
 0xfeb   :  { %1884 = vmax.xlane.f32.xlu1 %v1883_v26  ;;  %v2264_v27 = vpop.f32.mrf.mxu0 }
 0xffc   :  { %1894 = vrot.lane.b32.xlu1 %v2528_v51, %s2319_s2 }
0x1074   :  { %v1885_v28 = vpop.xlane.xlu1 %1884 }
0x1075   :  { %v1886_v38 = vsub.f32 %v1879_v25, %v1885_v28 }
0x1077   :  { %v1887_v29 = vmul.f32 1.442695, %v1886_v38 }
0x1078   :  { %v1895_v30 = vpop.permute.xlu1 %1894 }
0x1079   :  { %2310 = vpow2.f32 %v1887_v29  ;;  %2266 = vmatpush3.msk.msra.mxu1 %vm212_vm3, %v1895_v30 }
0x1086   :  { %v2311_v31 = vpop.eup %2310 }
0x1087   :  { %v1889_v32 = vsel %vm194_vm4, %v2311_v31, 0.0 }
0x1088   :  { %1890 = vadd.xlane.f32.xlu0 %v1889_v32 }
0x10a6   :  { %v1800_v0 = vpop.f32.mrf.mxu1 }
0x10a7   :  { %v1804_v40 = vadd.f32 %v2454_v56, %v1800_v0 }
0x10a8   :  { %v2259_v33 = vpop.f32.mrf.mxu1 }
0x1111   :  { %v1891_v34 = vpop.xlane.xlu0 %1890 }
0x1112   :  { %2312 = vrcp.f32 %v1891_v34 }
0x111f   :  { %v2313_v35 = vpop.eup %2312 }
0x1120   :  { %v1893_v36 = vmul.f32 %v2313_v35, %v2311_v31 }
0x1122   :  { %2268 = vmatmul.mubr.msk.f32.vlgmr.msra.gmra.mxu1 %vm208_vm5, %v1893_v36 }
0x11e2   :  { %v1967_v37 = vpop.f32.mrf.mxu1 }
0x11e3   :  { %2273 = vmatmul.mubr.msk.f32.vlgmr.msra.gmra.mxu0 %vm118_vm2, %v1967_v37 }
0x11e4   :  { %v2269_v39 = vpop.f32.mrf.mxu1 }
0x12a3   :  { %v2040_v41 = vpop.f32.mrf.mxu0 }
0x12a4   :  { %v2044_v42 = vadd.f32 %v2040_v41, %v1804_v40 }
0x12a5   :  { %v2274_v43 = vpop.f32.mrf.mxu0 }
0x12a6   :  { %2096 = vst.msk [vmem:[%s2592_s5 + $0x6] sm:$0x3] %vm599_vm6, %v2044_v42 }

</bundles_post_ra>
